<compile_context>
chip_gen: v7x
topology: tpu7x:2x2x1
jax: 0.10.0
libtpu: 0.0.40
codegen_flags: <defaults>
</compile_context>

<pallas_src>
import functools

import jax
import jax.numpy as jnp
from jax.experimental import pallas as pl
from jax.experimental.pallas import tpu as pltpu

EPS = 1e-5


def _gcn_kernel(a_ref, x_ref, pool_ref,
                w1_ref, b1_ref, w2_ref, b2_ref, w3_ref, b3_ref,
                g1_ref, be1_ref, g2_ref, be2_ref,
                wfc_ref, bfc_ref,
                out_ref):
    f32 = jnp.float32
    bf16 = jnp.bfloat16

    a = a_ref[...]            # [N, N] bf16, pre-normalized A_hat
    p = pool_ref[...]         # [Gp, N] bf16, pre-normalized mean-pool rows

    def fused_bn(h, g, be):
        # training-mode batch stats, biased variance, fused to scale/shift
        mean = jnp.mean(h, axis=0, keepdims=True)
        var = jnp.maximum(jnp.mean(h * h, axis=0, keepdims=True) - mean * mean, 0.0)
        scale = g * jax.lax.rsqrt(var + EPS)
        shift = be - mean * scale
        return h * scale + shift

    # conv1: relu((A_hat @ X) @ W1 + b1)  -- A applied on narrow feature side
    ax = jnp.dot(a, x_ref[...], preferred_element_type=f32)
    h = jnp.dot(ax.astype(bf16), w1_ref[...], preferred_element_type=f32) + b1_ref[...]
    h = jnp.maximum(h, 0.0)

    # conv2: relu(A_hat @ (H @ W2) + b2)
    hw = jnp.dot(h.astype(bf16), w2_ref[...], preferred_element_type=f32)
    h = jnp.dot(a, hw.astype(bf16), preferred_element_type=f32) + b2_ref[...]
    h = jnp.maximum(h, 0.0)

    # bn1
    h = fused_bn(h, g1_ref[...], be1_ref[...])

    # conv3: relu(A_hat @ (H @ W3) + b3)
    hw = jnp.dot(h.astype(bf16), w3_ref[...], preferred_element_type=f32)
    h = jnp.dot(a, hw.astype(bf16), preferred_element_type=f32) + b3_ref[...]
    h = jnp.maximum(h, 0.0)

    # bn2
    h = fused_bn(h, g2_ref[...], be2_ref[...])

    # global_mean_pool + fc  (lane-dense (Gp, 128) output slab)
    pooled = jnp.dot(p, h.astype(bf16), preferred_element_type=f32)
    out_ref[...] = (jnp.dot(pooled.astype(bf16), wfc_ref[...],
                            preferred_element_type=f32) + bfc_ref[...])


def _pad2(a, rows, cols):
    return jnp.zeros((rows, cols), a.dtype).at[:a.shape[0], :a.shape[1]].set(a)


def _round_up(v, m):
    return ((v + m - 1) // m) * m


def _per_batch_spec(*dims):
    return pl.BlockSpec((None,) + dims, lambda b: (b,) + (0,) * len(dims))


def _const_spec(arr):
    return pl.BlockSpec(arr.shape, lambda b: (0,) * arr.ndim)


def _preprocess(x, edge_index, batch, n, g_pad, f_pad):
    """Dense, pre-normalized bf16 A_hat, padded bf16 features, bf16 pool rows."""
    # A + I (set + max dedups; PyG would *sum* duplicate edge weights --
    # equivalent for unweighted simple graphs)
    adj = jnp.zeros((n, n), jnp.float32)
    adj = adj.at[edge_index[0], edge_index[1]].set(1.0)
    adj = jnp.maximum(adj, jnp.eye(n, dtype=jnp.float32))
    deg = jnp.sum(adj, axis=1)
    dinv = jax.lax.rsqrt(jnp.maximum(deg, 1e-12))
    a_hat = (adj * dinv[:, None] * dinv[None, :]).astype(jnp.bfloat16)

    onehot = (batch[None, :]
              == jnp.arange(g_pad, dtype=batch.dtype)[:, None]).astype(jnp.float32)
    counts = jnp.maximum(jnp.sum(onehot, axis=1, keepdims=True), 1.0)
    pool = (onehot / counts).astype(jnp.bfloat16)

    x_pad = _pad2(x.astype(jnp.float32), n, f_pad).astype(jnp.bfloat16)
    return a_hat, x_pad, pool


def _gcn_pallas(a_hat, x, pool, params):
    """a_hat: [B,N,N] bf16, x: [B,N,Fp] bf16, pool: [B,Gp,N] bf16."""
    bsz, n, _ = a_hat.shape
    f_pad = x.shape[-1]
    d0 = params["w1"].shape[1]
    d1 = params["w2"].shape[1]
    d2 = params["w3"].shape[1]
    num_classes = params["wfc"].shape[1]
    g_pad = pool.shape[1]

    d2_pad = _round_up(d2, 128)
    c_pad = _round_up(num_classes, 128)

    bf16 = jnp.bfloat16
    w1 = _pad2(params["w1"], f_pad, d0).astype(bf16)
    w2 = params["w2"].astype(bf16)
    w3 = _pad2(params["w3"], d1, d2_pad).astype(bf16)
    wfc = _pad2(params["wfc"], d2_pad, c_pad).astype(bf16)
    b1 = params["b1"]
    b2 = params["b2"]
    b3 = _pad2(params["b3"], 1, d2_pad)
    g1, be1 = params["g1"], params["be1"]
    g2 = _pad2(params["g2"], 1, d2_pad)
    be2 = _pad2(params["be2"], 1, d2_pad)
    bfc = _pad2(params["bfc"], 1, c_pad)

    weights = (w1, b1, w2, b2, w3, b3, g1, be1, g2, be2, wfc, bfc)

    in_specs = ([_per_batch_spec(n, n),          # A_hat      (per-step, pipelined)
                 _per_batch_spec(n, f_pad),      # features
                 _per_batch_spec(g_pad, n)]      # pool rows
                + [_const_spec(w) for w in weights])   # VMEM-resident weights
    out_specs = _per_batch_spec(g_pad, c_pad)

    flops = 2 * bsz * (n * n * f_pad + n * f_pad * d0      # conv1
                       + n * d0 * d1 + n * n * d1          # conv2
                       + n * d1 * d2_pad + n * n * d2_pad  # conv3
                       + g_pad * n * d2_pad                # pool
                       + g_pad * d2_pad * c_pad)           # fc
    inputs = (a_hat, x, pool) + weights
    bytes_accessed = (sum(int(a.size) * a.dtype.itemsize for a in inputs)
                      + bsz * g_pad * c_pad * 4)
    cost = pl.CostEstimate(flops=flops,
                           transcendentals=bsz * (d1 + d2_pad),
                           bytes_accessed=bytes_accessed)

    # TODO(synk): for N beyond a few thousand nodes (bf16 A_hat ~ 2*N^2 bytes,
    # hits v7x's VMEM first) row-block A_hat over an extra grid axis with
    # accumulate-then-finalize BN stats and set vmem_limit_bytes explicitly.
    return pl.pallas_call(
        _gcn_kernel,
        out_shape=jax.ShapeDtypeStruct((bsz, g_pad, c_pad), jnp.float32),
        grid=(bsz,),
        in_specs=in_specs,
        out_specs=out_specs,
        compiler_params=pltpu.CompilerParams(
            dimension_semantics=("parallel",)),
        cost_estimate=cost,
    )(*inputs)


@functools.partial(jax.jit, static_argnames=("num_graphs",))
def combined_gcn_forward(x, edge_index, batch, params, num_graphs):
    """Single-Data forward: x [N,F] f32, edge_index [2,E] i32, batch [N] i32."""
    n, f_in = x.shape
    num_classes = params["wfc"].shape[1]
    g_pad = _round_up(max(num_graphs, 8), 8)
    f_pad = _round_up(f_in, 8)

    a_hat, xb, pool = _preprocess(x, edge_index, batch, n, g_pad, f_pad)
    out = _gcn_pallas(a_hat[None], xb[None], pool[None], params)
    return out[0, :num_graphs, :num_classes]


def init_params(key, input_dim, hidden_dims, num_classes):
    k = jax.random.split(key, 4)
    d0, d1, d2 = hidden_dims

    def w(key, fan_in, fan_out):
        return (jax.random.normal(key, (fan_in, fan_out), jnp.float32)
                * (1.0 / jnp.sqrt(jnp.float32(fan_in))))

    return {
        "w1": w(k[0], input_dim, d0), "b1": jnp.zeros((1, d0), jnp.float32),
        "w2": w(k[1], d0, d1),        "b2": jnp.zeros((1, d1), jnp.float32),
        "w3": w(k[2], d1, d2),        "b3": jnp.zeros((1, d2), jnp.float32),
        "g1": jnp.ones((1, d1), jnp.float32), "be1": jnp.zeros((1, d1), jnp.float32),
        "g2": jnp.ones((1, d2), jnp.float32), "be2": jnp.zeros((1, d2), jnp.float32),
        "wfc": w(k[3], d2, num_classes),
        "bfc": jnp.zeros((1, num_classes), jnp.float32),
    }


if __name__ == "__main__":
    INPUT_DIM = 5
    HIDDEN = [256, 128, 64]
    NUM_CLASSES = 6
    NODES_PER_GRAPH = 64
    NUM_GRAPHS = 4
    N = NODES_PER_GRAPH * NUM_GRAPHS     # 256 nodes -> MXU-aligned node dim

    key = jax.random.PRNGKey(0)
    kx, kp = jax.random.split(key)

    # node features
    x = jax.random.normal(kx, (N, INPUT_DIM), jnp.float32)

    # deterministic edges: a ring inside each graph (undirected -> both dirs)
    src, dst = [], []
    for g in range(NUM_GRAPHS):
        base = g * NODES_PER_GRAPH
        for i in range(NODES_PER_GRAPH):
            a = base + i
            b = base + (i + 1) % NODES_PER_GRAPH
            src += [a, b]
            dst += [b, a]
    edge_index = jnp.array([src, dst], dtype=jnp.int32)

    # batch assignment vector
    batch = jnp.repeat(jnp.arange(NUM_GRAPHS, dtype=jnp.int32), NODES_PER_GRAPH)

    params = init_params(kp, INPUT_DIM, HIDDEN, NUM_CLASSES)

    # single-Data forward (original module semantics), grid=(1,)
    out = combined_gcn_forward(x, edge_index, batch, params, num_graphs=NUM_GRAPHS)
    jax.block_until_ready(out)
    assert out.shape == (NUM_GRAPHS, NUM_CLASSES)
    assert bool(jnp.all(jnp.isfinite(out)))

    # exercise the batched-grid path (two identical mini-batches, grid=(2,))
    a_hat, xb, pool = _preprocess(x, edge_index, batch, N, 8, 8)
    outs = _gcn_pallas(jnp.stack([a_hat, a_hat]),
                       jnp.stack([xb, xb]),
                       jnp.stack([pool, pool]), params)
    jax.block_until_ready(outs)
    assert outs.shape[0] == 2
    assert bool(jnp.allclose(outs[0], outs[1]))
    assert bool(jnp.allclose(outs[0, :NUM_GRAPHS, :NUM_CLASSES], out,
                             rtol=1e-5, atol=1e-5))

    print("KERNEL_OK")
</pallas_src>

<mosaic_0001>
module attributes {stable_mosaic.version = 11 : i64} {
  func.func @_gcn_kernel(%arg0: i32, %arg1: memref<1x256x256xbf16, #tpu.memory_space<vmem>>, %arg2: memref<1x256x8xbf16, #tpu.memory_space<vmem>>, %arg3: memref<1x8x256xbf16, #tpu.memory_space<vmem>>, %arg4: memref<8x256xbf16, #tpu.memory_space<vmem>>, %arg5: memref<1x256xf32, #tpu.memory_space<vmem>>, %arg6: memref<256x128xbf16, #tpu.memory_space<vmem>>, %arg7: memref<1x128xf32, #tpu.memory_space<vmem>>, %arg8: memref<128x128xbf16, #tpu.memory_space<vmem>>, %arg9: memref<1x128xf32, #tpu.memory_space<vmem>>, %arg10: memref<1x128xf32, #tpu.memory_space<vmem>>, %arg11: memref<1x128xf32, #tpu.memory_space<vmem>>, %arg12: memref<1x128xf32, #tpu.memory_space<vmem>>, %arg13: memref<1x128xf32, #tpu.memory_space<vmem>>, %arg14: memref<128x128xbf16, #tpu.memory_space<vmem>>, %arg15: memref<1x128xf32, #tpu.memory_space<vmem>>, %arg16: memref<1x8x128xf32, #tpu.memory_space<vmem>>) attributes {dimension_semantics = [#tpu.dimension_semantics<parallel>], iteration_bounds = array<i64: 1>, scalar_prefetch = 0 : i64, scratch_operands = 0 : i64, tpu.core_type = #tpu.core_type<tc>, window_params = [{transform_indices = @transform_0, window_bounds = array<i64: 1, 256, 256>}, {transform_indices = @transform_1, window_bounds = array<i64: 1, 256, 8>}, {transform_indices = @transform_2, window_bounds = array<i64: 1, 8, 256>}, {pipeline_mode = #tpu.pipeline_mode<synchronous>, transform_indices = @transform_3, window_bounds = array<i64: 8, 256>}, {pipeline_mode = #tpu.pipeline_mode<synchronous>, transform_indices = @transform_4, window_bounds = array<i64: 1, 256>}, {pipeline_mode = #tpu.pipeline_mode<synchronous>, transform_indices = @transform_5, window_bounds = array<i64: 256, 128>}, {pipeline_mode = #tpu.pipeline_mode<synchronous>, transform_indices = @transform_6, window_bounds = array<i64: 1, 128>}, {pipeline_mode = #tpu.pipeline_mode<synchronous>, transform_indices = @transform_7, window_bounds = array<i64: 128, 128>}, {pipeline_mode = #tpu.pipeline_mode<synchronous>, transform_indices = @transform_8, window_bounds = array<i64: 1, 128>}, {pipeline_mode = #tpu.pipeline_mode<synchronous>, transform_indices = @transform_9, window_bounds = array<i64: 1, 128>}, {pipeline_mode = #tpu.pipeline_mode<synchronous>, transform_indices = @transform_10, window_bounds = array<i64: 1, 128>}, {pipeline_mode = #tpu.pipeline_mode<synchronous>, transform_indices = @transform_11, window_bounds = array<i64: 1, 128>}, {pipeline_mode = #tpu.pipeline_mode<synchronous>, transform_indices = @transform_12, window_bounds = array<i64: 1, 128>}, {pipeline_mode = #tpu.pipeline_mode<synchronous>, transform_indices = @transform_13, window_bounds = array<i64: 128, 128>}, {pipeline_mode = #tpu.pipeline_mode<synchronous>, transform_indices = @transform_14, window_bounds = array<i64: 1, 128>}, {transform_indices = @transform_15, window_bounds = array<i64: 1, 8, 128>}]} {
    %c0 = arith.constant 0 : index
    %c0_0 = arith.constant 0 : index
    %c0_1 = arith.constant 0 : index
    %0 = vector.load %arg1[%c0, %c0_0, %c0_1] : memref<1x256x256xbf16, #tpu.memory_space<vmem>>, vector<1x256x256xbf16>
    %1 = vector.shape_cast %0 : vector<1x256x256xbf16> to vector<256x256xbf16>
    %c0_2 = arith.constant 0 : index
    %c0_3 = arith.constant 0 : index
    %c0_4 = arith.constant 0 : index
    %2 = vector.load %arg3[%c0_2, %c0_3, %c0_4] : memref<1x8x256xbf16, #tpu.memory_space<vmem>>, vector<1x8x256xbf16>
    %3 = vector.shape_cast %2 : vector<1x8x256xbf16> to vector<8x256xbf16>
    %c0_5 = arith.constant 0 : index
    %c0_6 = arith.constant 0 : index
    %c0_7 = arith.constant 0 : index
    %4 = vector.load %arg2[%c0_5, %c0_6, %c0_7] : memref<1x256x8xbf16, #tpu.memory_space<vmem>>, vector<1x256x8xbf16>
    %5 = vector.shape_cast %4 : vector<1x256x8xbf16> to vector<256x8xbf16>
    %cst = arith.constant dense<0.000000e+00> : vector<256x8xf32>
    %6 = tpu.matmul %1, %5, %cst {dimension_numbers = #tpu.dot_dimension_numbers<[1], [0], [0], [1], [0, 0, 1, 1], [], []>} : vector<256x256xbf16>, vector<256x8xbf16>, vector<256x8xf32> -> vector<256x8xf32>
    %7 = arith.truncf %6 : vector<256x8xf32> to vector<256x8xbf16>
    %c0_8 = arith.constant 0 : index
    %c0_9 = arith.constant 0 : index
    %8 = vector.load %arg4[%c0_8, %c0_9] : memref<8x256xbf16, #tpu.memory_space<vmem>>, vector<8x256xbf16>
    %cst_10 = arith.constant dense<0.000000e+00> : vector<256x256xf32>
    %9 = tpu.matmul %7, %8, %cst_10 {dimension_numbers = #tpu.dot_dimension_numbers<[1], [0], [0], [1], [0, 0, 1, 1], [], []>} : vector<256x8xbf16>, vector<8x256xbf16>, vector<256x256xf32> -> vector<256x256xf32>
    %c0_11 = arith.constant 0 : index
    %c0_12 = arith.constant 0 : index
    %10 = vector.load %arg5[%c0_11, %c0_12] : memref<1x256xf32, #tpu.memory_space<vmem>>, vector<1x256xf32>
    %11 = vector.broadcast %10 : vector<1x256xf32> to vector<256x256xf32>
    %12 = arith.addf %9, %11 : vector<256x256xf32>
    %cst_13 = arith.constant 0.000000e+00 : f32
    %13 = vector.broadcast %cst_13 : f32 to vector<256x256xf32>
    %14 = arith.maximumf %12, %13 : vector<256x256xf32>
    %15 = arith.truncf %14 : vector<256x256xf32> to vector<256x256xbf16>
    %c0_14 = arith.constant 0 : index
    %c0_15 = arith.constant 0 : index
    %16 = vector.load %arg6[%c0_14, %c0_15] : memref<256x128xbf16, #tpu.memory_space<vmem>>, vector<256x128xbf16>
    %cst_16 = arith.constant dense<0.000000e+00> : vector<256x128xf32>
    %17 = tpu.matmul %15, %16, %cst_16 {dimension_numbers = #tpu.dot_dimension_numbers<[1], [0], [0], [1], [0, 0, 1, 1], [], []>} : vector<256x256xbf16>, vector<256x128xbf16>, vector<256x128xf32> -> vector<256x128xf32>
    %18 = arith.truncf %17 : vector<256x128xf32> to vector<256x128xbf16>
    %cst_17 = arith.constant dense<0.000000e+00> : vector<256x128xf32>
    %19 = tpu.matmul %1, %18, %cst_17 {dimension_numbers = #tpu.dot_dimension_numbers<[1], [0], [0], [1], [0, 0, 1, 1], [], []>} : vector<256x256xbf16>, vector<256x128xbf16>, vector<256x128xf32> -> vector<256x128xf32>
    %c0_18 = arith.constant 0 : index
    %c0_19 = arith.constant 0 : index
    %20 = vector.load %arg7[%c0_18, %c0_19] : memref<1x128xf32, #tpu.memory_space<vmem>>, vector<1x128xf32>
    %21 = vector.broadcast %20 : vector<1x128xf32> to vector<256x128xf32>
    %22 = arith.addf %19, %21 : vector<256x128xf32>
    %cst_20 = arith.constant 0.000000e+00 : f32
    %23 = vector.broadcast %cst_20 : f32 to vector<256x128xf32>
    %24 = arith.maximumf %22, %23 : vector<256x128xf32>
    %c0_21 = arith.constant 0 : index
    %c0_22 = arith.constant 0 : index
    %25 = vector.load %arg10[%c0_21, %c0_22] : memref<1x128xf32, #tpu.memory_space<vmem>>, vector<1x128xf32>
    %c0_23 = arith.constant 0 : index
    %c0_24 = arith.constant 0 : index
    %26 = vector.load %arg11[%c0_23, %c0_24] : memref<1x128xf32, #tpu.memory_space<vmem>>, vector<1x128xf32>
    %cst_25 = arith.constant dense<0.000000e+00> : vector<128xf32>
    %27 = vector.multi_reduction <add>, %24, %cst_25 [0] : vector<256x128xf32> to vector<128xf32>
    %28 = vector.shape_cast %27 : vector<128xf32> to vector<1x128xf32>
    %cst_26 = arith.constant 2.560000e+02 : f32
    %29 = vector.broadcast %cst_26 : f32 to vector<1x128xf32>
    %30 = arith.divf %28, %29 : vector<1x128xf32>
    %31 = arith.mulf %24, %24 : vector<256x128xf32>
    %cst_27 = arith.constant dense<0.000000e+00> : vector<128xf32>
    %32 = vector.multi_reduction <add>, %31, %cst_27 [0] : vector<256x128xf32> to vector<128xf32>
    %33 = vector.shape_cast %32 : vector<128xf32> to vector<1x128xf32>
    %cst_28 = arith.constant 2.560000e+02 : f32
    %34 = vector.broadcast %cst_28 : f32 to vector<1x128xf32>
    %35 = arith.divf %33, %34 : vector<1x128xf32>
    %36 = arith.mulf %30, %30 : vector<1x128xf32>
    %37 = arith.subf %35, %36 : vector<1x128xf32>
    %cst_29 = arith.constant 0.000000e+00 : f32
    %38 = vector.broadcast %cst_29 : f32 to vector<1x128xf32>
    %39 = arith.maximumf %37, %38 : vector<1x128xf32>
    %cst_30 = arith.constant 9.99999974E-6 : f32
    %40 = vector.broadcast %cst_30 : f32 to vector<1x128xf32>
    %41 = arith.addf %39, %40 : vector<1x128xf32>
    %42 = math.rsqrt %41 : vector<1x128xf32>
    %43 = arith.mulf %25, %42 : vector<1x128xf32>
    %44 = arith.mulf %30, %43 : vector<1x128xf32>
    %45 = arith.subf %26, %44 : vector<1x128xf32>
    %46 = vector.broadcast %43 : vector<1x128xf32> to vector<256x128xf32>
    %47 = arith.mulf %24, %46 : vector<256x128xf32>
    %48 = vector.broadcast %45 : vector<1x128xf32> to vector<256x128xf32>
    %49 = arith.addf %47, %48 : vector<256x128xf32>
    %50 = arith.truncf %49 : vector<256x128xf32> to vector<256x128xbf16>
    %c0_31 = arith.constant 0 : index
    %c0_32 = arith.constant 0 : index
    %51 = vector.load %arg8[%c0_31, %c0_32] : memref<128x128xbf16, #tpu.memory_space<vmem>>, vector<128x128xbf16>
    %cst_33 = arith.constant dense<0.000000e+00> : vector<256x128xf32>
    %52 = tpu.matmul %50, %51, %cst_33 {dimension_numbers = #tpu.dot_dimension_numbers<[1], [0], [0], [1], [0, 0, 1, 1], [], []>} : vector<256x128xbf16>, vector<128x128xbf16>, vector<256x128xf32> -> vector<256x128xf32>
    %53 = arith.truncf %52 : vector<256x128xf32> to vector<256x128xbf16>
    %cst_34 = arith.constant dense<0.000000e+00> : vector<256x128xf32>
    %54 = tpu.matmul %1, %53, %cst_34 {dimension_numbers = #tpu.dot_dimension_numbers<[1], [0], [0], [1], [0, 0, 1, 1], [], []>} : vector<256x256xbf16>, vector<256x128xbf16>, vector<256x128xf32> -> vector<256x128xf32>
    %c0_35 = arith.constant 0 : index
    %c0_36 = arith.constant 0 : index
    %55 = vector.load %arg9[%c0_35, %c0_36] : memref<1x128xf32, #tpu.memory_space<vmem>>, vector<1x128xf32>
    %56 = vector.broadcast %55 : vector<1x128xf32> to vector<256x128xf32>
    %57 = arith.addf %54, %56 : vector<256x128xf32>
    %cst_37 = arith.constant 0.000000e+00 : f32
    %58 = vector.broadcast %cst_37 : f32 to vector<256x128xf32>
    %59 = arith.maximumf %57, %58 : vector<256x128xf32>
    %c0_38 = arith.constant 0 : index
    %c0_39 = arith.constant 0 : index
    %60 = vector.load %arg12[%c0_38, %c0_39] : memref<1x128xf32, #tpu.memory_space<vmem>>, vector<1x128xf32>
    %c0_40 = arith.constant 0 : index
    %c0_41 = arith.constant 0 : index
    %61 = vector.load %arg13[%c0_40, %c0_41] : memref<1x128xf32, #tpu.memory_space<vmem>>, vector<1x128xf32>
    %cst_42 = arith.constant dense<0.000000e+00> : vector<128xf32>
    %62 = vector.multi_reduction <add>, %59, %cst_42 [0] : vector<256x128xf32> to vector<128xf32>
    %63 = vector.shape_cast %62 : vector<128xf32> to vector<1x128xf32>
    %cst_43 = arith.constant 2.560000e+02 : f32
    %64 = vector.broadcast %cst_43 : f32 to vector<1x128xf32>
    %65 = arith.divf %63, %64 : vector<1x128xf32>
    %66 = arith.mulf %59, %59 : vector<256x128xf32>
    %cst_44 = arith.constant dense<0.000000e+00> : vector<128xf32>
    %67 = vector.multi_reduction <add>, %66, %cst_44 [0] : vector<256x128xf32> to vector<128xf32>
    %68 = vector.shape_cast %67 : vector<128xf32> to vector<1x128xf32>
    %cst_45 = arith.constant 2.560000e+02 : f32
    %69 = vector.broadcast %cst_45 : f32 to vector<1x128xf32>
    %70 = arith.divf %68, %69 : vector<1x128xf32>
    %71 = arith.mulf %65, %65 : vector<1x128xf32>
    %72 = arith.subf %70, %71 : vector<1x128xf32>
    %cst_46 = arith.constant 0.000000e+00 : f32
    %73 = vector.broadcast %cst_46 : f32 to vector<1x128xf32>
    %74 = arith.maximumf %72, %73 : vector<1x128xf32>
    %cst_47 = arith.constant 9.99999974E-6 : f32
    %75 = vector.broadcast %cst_47 : f32 to vector<1x128xf32>
    %76 = arith.addf %74, %75 : vector<1x128xf32>
    %77 = math.rsqrt %76 : vector<1x128xf32>
    %78 = arith.mulf %60, %77 : vector<1x128xf32>
    %79 = arith.mulf %65, %78 : vector<1x128xf32>
    %80 = arith.subf %61, %79 : vector<1x128xf32>
    %81 = vector.broadcast %78 : vector<1x128xf32> to vector<256x128xf32>
    %82 = arith.mulf %59, %81 : vector<256x128xf32>
    %83 = vector.broadcast %80 : vector<1x128xf32> to vector<256x128xf32>
    %84 = arith.addf %82, %83 : vector<256x128xf32>
    %85 = arith.truncf %84 : vector<256x128xf32> to vector<256x128xbf16>
    %cst_48 = arith.constant dense<0.000000e+00> : vector<8x128xf32>
    %86 = tpu.matmul %3, %85, %cst_48 {dimension_numbers = #tpu.dot_dimension_numbers<[1], [0], [0], [1], [0, 0, 1, 1], [], []>} : vector<8x256xbf16>, vector<256x128xbf16>, vector<8x128xf32> -> vector<8x128xf32>
    %87 = arith.truncf %86 : vector<8x128xf32> to vector<8x128xbf16>
    %c0_49 = arith.constant 0 : index
    %c0_50 = arith.constant 0 : index
    %88 = vector.load %arg14[%c0_49, %c0_50] : memref<128x128xbf16, #tpu.memory_space<vmem>>, vector<128x128xbf16>
    %cst_51 = arith.constant dense<0.000000e+00> : vector<8x128xf32>
    %89 = tpu.matmul %87, %88, %cst_51 {dimension_numbers = #tpu.dot_dimension_numbers<[1], [0], [0], [1], [0, 0, 1, 1], [], []>} : vector<8x128xbf16>, vector<128x128xbf16>, vector<8x128xf32> -> vector<8x128xf32>
    %c0_52 = arith.constant 0 : index
    %c0_53 = arith.constant 0 : index
    %90 = vector.load %arg15[%c0_52, %c0_53] : memref<1x128xf32, #tpu.memory_space<vmem>>, vector<1x128xf32>
    %91 = vector.broadcast %90 : vector<1x128xf32> to vector<8x128xf32>
    %92 = arith.addf %89, %91 : vector<8x128xf32>
    %c0_54 = arith.constant 0 : index
    %c0_55 = arith.constant 0 : index
    %c0_56 = arith.constant 0 : index
    %93 = vector.load %arg16[%c0_54, %c0_55, %c0_56] : memref<1x8x128xf32, #tpu.memory_space<vmem>>, vector<1x8x128xf32>
    %94 = vector.shape_cast %93 : vector<1x8x128xf32> to vector<8x128xf32>
    %95 = vector.shape_cast %92 : vector<8x128xf32> to vector<1x8x128xf32>
    tpu.vector_store %arg16[%c0_54, %c0_55, %c0_56], %95 {strides = array<i32>} : memref<1x8x128xf32, #tpu.memory_space<vmem>>, vector<1x8x128xf32>,
    return
  }
  func.func @transform_0(%arg0: i32) -> (i32, i32, i32) {
    %c0_i32 = arith.constant 0 : i32
    %c0_i32_0 = arith.constant 0 : i32
    %c0_i32_1 = arith.constant 0 : i32
    return %arg0, %c0_i32, %c0_i32_0 : i32, i32, i32
  }
  func.func @transform_1(%arg0: i32) -> (i32, i32, i32) {
    %c0_i32 = arith.constant 0 : i32
    %c0_i32_0 = arith.constant 0 : i32
    %c0_i32_1 = arith.constant 0 : i32
    return %arg0, %c0_i32, %c0_i32_0 : i32, i32, i32
  }
  func.func @transform_2(%arg0: i32) -> (i32, i32, i32) {
    %c0_i32 = arith.constant 0 : i32
    %c0_i32_0 = arith.constant 0 : i32
    %c0_i32_1 = arith.constant 0 : i32
    return %arg0, %c0_i32, %c0_i32_0 : i32, i32, i32
  }
  func.func @transform_3(%arg0: i32) -> (i32, i32) {
    %c0_i32 = arith.constant 0 : i32
    %c0_i32_0 = arith.constant 0 : i32
    %c0_i32_1 = arith.constant 0 : i32
    return %c0_i32, %c0_i32_0 : i32, i32
  }
  func.func @transform_4(%arg0: i32) -> (i32, i32) {
    %c0_i32 = arith.constant 0 : i32
    %c0_i32_0 = arith.constant 0 : i32
    %c0_i32_1 = arith.constant 0 : i32
    return %c0_i32, %c0_i32_0 : i32, i32
  }
  func.func @transform_5(%arg0: i32) -> (i32, i32) {
    %c0_i32 = arith.constant 0 : i32
    %c0_i32_0 = arith.constant 0 : i32
    %c0_i32_1 = arith.constant 0 : i32
    return %c0_i32, %c0_i32_0 : i32, i32
  }
  func.func @transform_6(%arg0: i32) -> (i32, i32) {
    %c0_i32 = arith.constant 0 : i32
    %c0_i32_0 = arith.constant 0 : i32
    %c0_i32_1 = arith.constant 0 : i32
    return %c0_i32, %c0_i32_0 : i32, i32
  }
  func.func @transform_7(%arg0: i32) -> (i32, i32) {
    %c0_i32 = arith.constant 0 : i32
    %c0_i32_0 = arith.constant 0 : i32
    %c0_i32_1 = arith.constant 0 : i32
    return %c0_i32, %c0_i32_0 : i32, i32
  }
  func.func @transform_8(%arg0: i32) -> (i32, i32) {
    %c0_i32 = arith.constant 0 : i32
    %c0_i32_0 = arith.constant 0 : i32
    %c0_i32_1 = arith.constant 0 : i32
    return %c0_i32, %c0_i32_0 : i32, i32
  }
  func.func @transform_9(%arg0: i32) -> (i32, i32) {
    %c0_i32 = arith.constant 0 : i32
    %c0_i32_0 = arith.constant 0 : i32
    %c0_i32_1 = arith.constant 0 : i32
    return %c0_i32, %c0_i32_0 : i32, i32
  }
  func.func @transform_10(%arg0: i32) -> (i32, i32) {
    %c0_i32 = arith.constant 0 : i32
    %c0_i32_0 = arith.constant 0 : i32
    %c0_i32_1 = arith.constant 0 : i32
    return %c0_i32, %c0_i32_0 : i32, i32
  }
  func.func @transform_11(%arg0: i32) -> (i32, i32) {
    %c0_i32 = arith.constant 0 : i32
    %c0_i32_0 = arith.constant 0 : i32
    %c0_i32_1 = arith.constant 0 : i32
    return %c0_i32, %c0_i32_0 : i32, i32
  }
  func.func @transform_12(%arg0: i32) -> (i32, i32) {
    %c0_i32 = arith.constant 0 : i32
    %c0_i32_0 = arith.constant 0 : i32
    %c0_i32_1 = arith.constant 0 : i32
    return %c0_i32, %c0_i32_0 : i32, i32
  }
  func.func @transform_13(%arg0: i32) -> (i32, i32) {
    %c0_i32 = arith.constant 0 : i32
    %c0_i32_0 = arith.constant 0 : i32
    %c0_i32_1 = arith.constant 0 : i32
    return %c0_i32, %c0_i32_0 : i32, i32
  }
  func.func @transform_14(%arg0: i32) -> (i32, i32) {
    %c0_i32 = arith.constant 0 : i32
    %c0_i32_0 = arith.constant 0 : i32
    %c0_i32_1 = arith.constant 0 : i32
    return %c0_i32, %c0_i32_0 : i32, i32
  }
  func.func @transform_15(%arg0: i32) -> (i32, i32, i32) {
    %c0_i32 = arith.constant 0 : i32
    %c0_i32_0 = arith.constant 0 : i32
    %c0_i32_1 = arith.constant 0 : i32
    return %arg0, %c0_i32, %c0_i32_0 : i32, i32, i32
  }
}

</mosaic_0001>

<bundles_post_ra>
// kernel: combined_gcn_forward.1
= control target key start
LH: loop header
LB: loop body
LE: loop exit
PB: predicated region body
PF: predicated region fallthrough
CT: control target
= control target key end

     0   :  { %vm616_vm0 = vcmask 1043456   ;;  %v3304_v47 = vmov 0   ;;  %vm567_vm1 = vcmask 64512   ;;  %vm3306_vm2 = vmmov 0   ;;  %s4558_s1 = inlined_call_operand.vmem [shape: bf16[1,256,8], index: 1, kind: input, shape index: {}]   ;;  %s4559_s0 = inlined_call_operand.vmem [shape: bf16[1,256,256], index: 0, kind: input, shape index: {}]   ;;  %s4560_s3 = inlined_call_operand.vmem [shape: bf16[8,256], index: 3, kind: input, shape index: {}]   ;;  %s4561_s5 = inlined_call_operand.vmem [shape: bf16[256,128], index: 5, kind: input, shape index: {}]   ;;  %s4562_s4 = inlined_call_operand.vmem [shape: f32[1,256], index: 4, kind: input, shape index: {}]   ;;  %s4563_s6 = inlined_call_operand.vmem [shape: f32[1,128], index: 6, kind: input, shape index: {}]   ;;  %s4564_s7 = inlined_call_operand.vmem [shape: bf16[128,128], index: 7, kind: input, shape index: {}]   ;;  %s4565_s9 = inlined_call_operand.vmem [shape: f32[1,128], index: 9, kind: input, shape index: {}]   ;;  %s4566_s10 = inlined_call_operand.vmem [shape: f32[1,128], index: 10, kind: input, shape index: {}]   ;;  %s4567_s8 = inlined_call_operand.vmem [shape: f32[1,128], index: 8, kind: input, shape index: {}]   ;;  %s4568_s2 = inlined_call_operand.vmem [shape: bf16[1,8,256], index: 2, kind: input, shape index: {}]   ;;  %s4569_s13 = inlined_call_operand.vmem [shape: bf16[128,128], index: 13, kind: input, shape index: {}]   ;;  %s4570_s11 = inlined_call_operand.vmem [shape: f32[1,128], index: 11, kind: input, shape index: {}]   ;;  %s4571_s12 = inlined_call_operand.vmem [shape: f32[1,128], index: 12, kind: input, shape index: {}]   ;;  %s4572_s14 = inlined_call_operand.vmem [shape: f32[1,128], index: 14, kind: input, shape index: {}]   ;;  %s4573_s15 = inlined_call_operand.vmem [shape: f32[1,8,128], index: 15, kind: output, shape index: {}]  }
   0x1   :  { %v3137_v0 = vld [vmem:[%s4558_s1 + $0x40] sm:$0xff]   ;;  %v3139_v2 = vld [vmem:[%s4558_s1 + $0x48] sm:$0xff]   ;;  %v3141_v4 = vld [vmem:[%s4558_s1 + $0x50] sm:$0xff]  }
   0x2   :  { %v3138_v1 = vld [vmem:[%s4558_s1] sm:$0xff]   ;;  %2547 = vmatprep.subr.bf16.mxu0 %v3137_v0  ;;  %3118 = vmatprep.subr.bf16.mxu1 %v3137_v0  ;;  %v3140_v3 = vld [vmem:[%s4558_s1 + $0x8] sm:$0xff]   ;;  %v3142_v5 = vld [vmem:[%s4558_s1 + $0x10] sm:$0xff]  }
   0x3   :  { %2548 = vmatpush3.bf16.msra.mxu0 %v3138_v1  ;;  %3126 = vmatpush3.bf16.msra.mxu1 %v3138_v1  ;;  %v3143_v6 = vld [vmem:[%s4558_s1 + $0x58] sm:$0xff]   ;;  %v3145_v8 = vld [vmem:[%s4558_s1 + $0x60] sm:$0xff]   ;;  %v3147_v10 = vld [vmem:[%s4558_s1 + $0x68] sm:$0xff]  }
   0x4   :  { %2549 = vmatprep.subr.bf16.mxu0 %v3139_v2  ;;  %3119 = vmatprep.subr.bf16.mxu1 %v3139_v2  ;;  %v3144_v7 = vld [vmem:[%s4558_s1 + $0x18] sm:$0xff]   ;;  %v3146_v9 = vld [vmem:[%s4558_s1 + $0x20] sm:$0xff]   ;;  %v3148_v12 = vld [vmem:[%s4558_s1 + $0x28] sm:$0xff]  }
   0x5   :  { %v3423_v11 = vld [vmem:[%s4559_s0 + $0x4] ss:$8 sps:$4 sm:$0xff]   ;;  %v3149_v13 = vld [vmem:[%s4558_s1 + $0x70] sm:$0xff]   ;;  %v3151_v15 = vld [vmem:[%s4558_s1 + $0x78] sm:$0xff]  }
   0x6   :  { %404 = vmatprep.mubr.bf16.mxu0 %v3423_v11  ;;  %v3150_v14 = vld [vmem:[%s4558_s1 + $0x30] sm:$0xff]   ;;  %v3152_v16 = vld [vmem:[%s4558_s1 + $0x38] sm:$0xff]   ;;  %v3155_v17 = vld [vmem:[%s4559_s0] ss:$8 sps:$4 sm:$0xff]  }
   0x7   :  { %2550 = vmatpush3.bf16.msra.mxu0 %v3140_v3  ;;  %3127 = vmatpush3.bf16.msra.mxu1 %v3140_v3  ;;  %v3156_v18 = vld [vmem:[%s4559_s0 + $0x14] ss:$8 sps:$4 sm:$0xff]   ;;  %v3200_v20 = vld [vmem:[%s4559_s0 + $0xf0] ss:$8 sps:$4 sm:$0xff]   ;;  %v3159_v22 = vld [vmem:[%s4559_s0 + $0x24] ss:$8 sps:$4 sm:$0xff]  }
   0x8   :  { %2551 = vmatprep.subr.bf16.mxu0 %v3141_v4  ;;  %3120 = vmatprep.subr.bf16.mxu1 %v3141_v4  ;;  %v3198_v19 = vld [vmem:[%s4559_s0 + $0xf4] ss:$8 sps:$4 sm:$0xff]   ;;  %v3158_v21 = vld [vmem:[%s4559_s0 + $0x10] ss:$8 sps:$4 sm:$0xff]   ;;  %v3161_v23 = vld [vmem:[%s4559_s0 + $0x20] ss:$8 sps:$4 sm:$0xff]  }
   0x9   :  { %524 = vmatprep.mubr.bf16.mxu1 %v3198_v19  ;;  %v3162_v24 = vld [vmem:[%s4559_s0 + $0x34] ss:$8 sps:$4 sm:$0xff]   ;;  %v3164_v25 = vld [vmem:[%s4559_s0 + $0x30] ss:$8 sps:$4 sm:$0xff]   ;;  %v3165_v26 = vld [vmem:[%s4559_s0 + $0x44] ss:$8 sps:$4 sm:$0xff]  }
   0xa   :  { %v3167_v27 = vld [vmem:[%s4559_s0 + $0x40] ss:$8 sps:$4 sm:$0xff]   ;;  %v3168_v28 = vld [vmem:[%s4559_s0 + $0x54] ss:$8 sps:$4 sm:$0xff]   ;;  %v3170_v29 = vld [vmem:[%s4559_s0 + $0x50] ss:$8 sps:$4 sm:$0xff]  }
   0xb   :  { %2552 = vmatpush3.bf16.msra.mxu0 %v3142_v5  ;;  %3128 = vmatpush3.bf16.msra.mxu1 %v3142_v5  ;;  %v3171_v30 = vld [vmem:[%s4559_s0 + $0x64] ss:$8 sps:$4 sm:$0xff]   ;;  %v3173_v31 = vld [vmem:[%s4559_s0 + $0x60] ss:$8 sps:$4 sm:$0xff]   ;;  %v3174_v32 = vld [vmem:[%s4559_s0 + $0x74] ss:$8 sps:$4 sm:$0xff]  }
   0xc   :  { %2553 = vmatprep.subr.bf16.mxu0 %v3143_v6  ;;  %3121 = vmatprep.subr.bf16.mxu1 %v3143_v6  ;;  %v3176_v33 = vld [vmem:[%s4559_s0 + $0x70] ss:$8 sps:$4 sm:$0xff]   ;;  %v3177_v34 = vld [vmem:[%s4559_s0 + $0x84] ss:$8 sps:$4 sm:$0xff]   ;;  %v3179_v35 = vld [vmem:[%s4559_s0 + $0x80] ss:$8 sps:$4 sm:$0xff]  }
   0xd   :  { %v3180_v36 = vld [vmem:[%s4559_s0 + $0x94] ss:$8 sps:$4 sm:$0xff]   ;;  %v3182_v37 = vld [vmem:[%s4559_s0 + $0x90] ss:$8 sps:$4 sm:$0xff]   ;;  %v3183_v38 = vld [vmem:[%s4559_s0 + $0xa4] ss:$8 sps:$4 sm:$0xff]  }
   0xe   :  { %v3185_v39 = vld [vmem:[%s4559_s0 + $0xa0] ss:$8 sps:$4 sm:$0xff]   ;;  %v3186_v40 = vld [vmem:[%s4559_s0 + $0xb4] ss:$8 sps:$4 sm:$0xff]   ;;  %v3188_v41 = vld [vmem:[%s4559_s0 + $0xb0] ss:$8 sps:$4 sm:$0xff]  }
   0xf   :  { %2554 = vmatpush3.bf16.msra.mxu0 %v3144_v7  ;;  %3129 = vmatpush3.bf16.msra.mxu1 %v3144_v7  ;;  %v549_v42 = vld [vmem:[%s4560_s3] sm:$0xff]  ;;  %v3192_v49 = vld [vmem:[%s4559_s0 + $0xd4] ss:$8 sps:$4 sm:$0xff]   ;;  %v3194_v50 = vld [vmem:[%s4559_s0 + $0xd0] ss:$8 sps:$4 sm:$0xff]  }
  0x10   :  { %2555 = vmatprep.subr.bf16.mxu0 %v3145_v8  ;;  %3122 = vmatprep.subr.bf16.mxu1 %v3145_v8  ;;  %v3189_v43 = vld [vmem:[%s4559_s0 + $0xc4] ss:$8 sps:$4 sm:$0xff]   ;;  %v2492_v44 = vcombine.high %v549_v42, %v549_v42  ;;  %v2491_v45 = vcombine.low %v549_v42, %v549_v42  ;;  %v3191_v48 = vld [vmem:[%s4559_s0 + $0xc0] ss:$8 sps:$4 sm:$0xff]   ;;  %v3210_v19 = vld [vmem:[%s4561_s5 + $0x18] sm:$0xff]  }
  0x11   :  { %v3195_v51 = vld [vmem:[%s4559_s0 + $0xe4] ss:$8 sps:$4 sm:$0xff]   ;;  %v3197_v52 = vld [vmem:[%s4559_s0 + $0xe0] ss:$8 sps:$4 sm:$0xff]  }
  0x12   :  { %v618_v46 = vsel %vm616_vm0, %v2491_v45, 0  ;;  %v3203_v55 = vld [vmem:[%s4561_s5 + $0x40] sm:$0xff]   ;;  %v3205_v0 = vld [vmem:[%s4561_s5 + $0x48] sm:$0xff]  }
  0x13   :  { %2556 = vmatpush3.bf16.msra.mxu0 %v3146_v9  ;;  %3130 = vmatpush3.bf16.msra.mxu1 %v3146_v9  ;;  %v3204_v61 = vld [vmem:[%s4561_s5] sm:$0xff]   ;;  %v3206_v7 = vld [vmem:[%s4561_s5 + $0x8] sm:$0xff]  }
  0x14   :  { %2557 = vmatprep.subr.bf16.mxu0 %v3147_v10  ;;  %3123 = vmatprep.subr.bf16.mxu1 %v3147_v10  ;;  %v3207_v10 = vld [vmem:[%s4561_s5 + $0x50] sm:$0xff]  }
  0x17   :  { %2558 = vmatpush3.bf16.msra.mxu0 %v3148_v12  ;;  %3131 = vmatpush3.bf16.msra.mxu1 %v3148_v12 }
  0x18   :  { %2559 = vmatprep.subr.bf16.mxu0 %v3149_v13  ;;  %3124 = vmatprep.subr.bf16.mxu1 %v3149_v13 }
  0x1b   :  { %2560 = vmatpush3.bf16.msra.mxu0 %v3150_v14  ;;  %3132 = vmatpush3.bf16.msra.mxu1 %v3150_v14  ;;  %v3208_v14 = vld [vmem:[%s4561_s5 + $0x10] sm:$0xff]  }
  0x1c   :  { %2561 = vmatprep.subr.bf16.mxu0 %v3151_v15  ;;  %3125 = vmatprep.subr.bf16.mxu1 %v3151_v15  ;;  %v3209_v15 = vld [vmem:[%s4561_s5 + $0x58] sm:$0xff]  }
  0x1f   :  { %2562 = vmatpush3.bf16.msra.mxu0 %v3152_v16  ;;  %3133 = vmatpush3.bf16.msra.mxu1 %v3152_v16 }
  0x20   :  { %2493 = vmatprep.subr.msk.bf16.mxu1 %vm616_vm0, %v2492_v44 }
  0x22   :  { %405 = vmatmul.mubr.bf16.vlgmr.msra.gmra.mrb[0].mxu0 %v3155_v17  ;;  %525 = vmatmul.mubr.bf16.vlgmr.msra.gmra.mrb[0].mxu1 %v3200_v20 }
  0x23   :  { %412 = vmatprep.mubr.bf16.mxu0 %v3156_v18  ;;  %624 = vmatpush1.bf16.msra.mxu1 %v618_v46 }
  0x24   :  { %655 = vmatprep.mubr.bf16.mxu1 %v3304_v47  ;;  %2659 = vmatprep.subr.bf16.mxu1 %v3203_v55 }
  0x2a   :  { %413 = vmatmul.mubr.bf16.gmra.mrb[4].mxu0 %v3158_v21 }
  0x2b   :  { %420 = vmatprep.mubr.bf16.mxu0 %v3159_v22  ;;  %v3211_v22 = vld [vmem:[%s4561_s5 + $0x60] sm:$0xff]  }
  0x32   :  { %421 = vmatmul.mubr.bf16.gmra.mrb[8].mxu0 %v3161_v23 }
  0x33   :  { %428 = vmatprep.mubr.bf16.mxu0 %v3162_v24 }
  0x3a   :  { %429 = vmatmul.mubr.bf16.gmra.mrb[12].mxu0 %v3164_v25  ;;  %v3212_v25 = vld [vmem:[%s4561_s5 + $0x20] sm:$0xff]  }
  0x3b   :  { %436 = vmatprep.mubr.bf16.mxu0 %v3165_v26 }
  0x42   :  { %437 = vmatmul.mubr.bf16.gmra.mrb[16].mxu0 %v3167_v27  ;;  %v3213_v27 = vld [vmem:[%s4561_s5 + $0x68] sm:$0xff]  }
  0x43   :  { %444 = vmatprep.mubr.bf16.mxu0 %v3168_v28 }
  0x4a   :  { %445 = vmatmul.mubr.bf16.gmra.mrb[20].mxu0 %v3170_v29 }
  0x4b   :  { %452 = vmatprep.mubr.bf16.mxu0 %v3171_v30 }
  0x52   :  { %453 = vmatmul.mubr.bf16.gmra.mrb[24].mxu0 %v3173_v31 }
  0x53   :  { %460 = vmatprep.mubr.bf16.mxu0 %v3174_v32 }
  0x5a   :  { %461 = vmatmul.mubr.bf16.gmra.mrb[28].mxu0 %v3176_v33 }
  0x5b   :  { %468 = vmatprep.mubr.bf16.mxu0 %v3177_v34 }
  0x62   :  { %469 = vmatmul.mubr.bf16.gmra.mrb[32].mxu0 %v3179_v35 }
  0x63   :  { %476 = vmatprep.mubr.bf16.mxu0 %v3180_v36 }
  0x6a   :  { %477 = vmatmul.mubr.bf16.gmra.mrb[36].mxu0 %v3182_v37 }
  0x6b   :  { %484 = vmatprep.mubr.bf16.mxu0 %v3183_v38 }
  0x72   :  { %485 = vmatmul.mubr.bf16.gmra.mrb[40].mxu0 %v3185_v39 }
  0x73   :  { %492 = vmatprep.mubr.bf16.mxu0 %v3186_v40 }
  0x7a   :  { %493 = vmatmul.mubr.bf16.gmra.mrb[44].mxu0 %v3188_v41 }
  0x7b   :  { %500 = vmatprep.mubr.bf16.mxu0 %v3189_v43 }
  0x82   :  { %501 = vmatmul.mubr.bf16.gmra.mrb[48].mxu0 %v3191_v48 }
  0x83   :  { %508 = vmatprep.mubr.bf16.mxu0 %v3192_v49 }
  0x8a   :  { %509 = vmatmul.mubr.bf16.gmra.mrb[52].mxu0 %v3194_v50 }
  0x8b   :  { %516 = vmatprep.mubr.bf16.mxu0 %v3195_v51 }
  0x92   :  { %517 = vmatmul.mubr.bf16.gmra.mrb[56].mxu0 %v3197_v52 }
  0x93   :  { %1256 = vmatprep.mubr.bf16.mxu0 %v3423_v11 }
  0xf5   :  { %v2563_v53 = vpop.f32.mrb[0].mxu0  ;;  %v2653_v60 = vpop.f32.mrb[0].mxu1 }
  0xf6   :  { %v2564_v54 = vpop.f32.mrb[1].mxu0  ;;  %v2654_v63 = vpop.f32.mrb[1].mxu1 }
  0xf7   :  { %v2565_v56 = vadd.f32 %v2564_v54, %v2563_v53  ;;  %v2566_v57 = vpop.f32.mrb[2].mxu0  ;;  %v3548_v1 = vadd.f32 %v2654_v63, %v2653_v60  ;;  %v2656_v2 = vpop.f32.mrb[2].mxu1 }
  0xf8   :  { %v2567_v58 = vpop.f32.mrb[3].mxu0  ;;  %v2657_v4 = vpop.f32.mrb[3].mxu1 }
  0xf9   :  { %v2568_v59 = vadd.f32 %v2567_v58, %v2566_v57  ;;  %v3552_v6 = vadd.f32 %v2657_v4, %v2656_v2 }
  0xfb   :  { %v533_v62 = vpack.c.bf16 %v2568_v59, %v2565_v56  ;;  %v548_v12 = vpack.c.bf16 %v3552_v6, %v3548_v1 }
  0xfd   :  { %v2569_v3 = vpop.f32.mrb[4].mxu0  ;;  %2494 = vmatmul.mubr.msk.bf16.vlgmr.msra.gmra.mrb[4].mxu1 %vm567_vm1, %v533_v62 }
  0xfe   :  { %v2570_v5 = vpop.f32.mrb[5].mxu0  ;;  %665 = vmatprep.mubr.bf16.mxu1 %v3304_v47  ;;  %2660 = vmatpush3.bf16.msra.mxu1 %v3204_v61 }
  0xff   :  { %v2571_v8 = vadd.f32 %v2570_v5, %v2569_v3  ;;  %v2572_v9 = vpop.f32.mrb[6].mxu0  ;;  %2661 = vmatprep.subr.bf16.mxu1 %v3205_v0 }
 0x100   :  { %v2573_v11 = vpop.f32.mrb[7].mxu0 }
 0x101   :  { %v2574_v13 = vadd.f32 %v2573_v11, %v2572_v9 }
 0x102   :  { %2662 = vmatpush3.bf16.msra.mxu1 %v3206_v7 }
 0x103   :  { %v534_v16 = vpack.c.bf16 %v2574_v13, %v2571_v8  ;;  %2663 = vmatprep.subr.bf16.mxu1 %v3207_v10 }
 0x105   :  { %v2575_v17 = vpop.f32.mrb[8].mxu0  ;;  %2495 = vmatmul.mubr.msk.bf16.gmra.mrb[8].mxu1 %vm567_vm1, %v534_v16 }
 0x106   :  { %v2576_v18 = vpop.f32.mrb[9].mxu0  ;;  %675 = vmatprep.mubr.bf16.mxu1 %v3304_v47  ;;  %2664 = vmatpush3.bf16.msra.mxu1 %v3208_v14 }
 0x107   :  { %v2577_v20 = vadd.f32 %v2576_v18, %v2575_v17  ;;  %v2578_v21 = vpop.f32.mrb[10].mxu0  ;;  %2665 = vmatprep.subr.bf16.mxu1 %v3209_v15 }
 0x108   :  { %v2579_v23 = vpop.f32.mrb[11].mxu0 }
 0x109   :  { %v2580_v24 = vadd.f32 %v2579_v23, %v2578_v21 }
 0x10a   :  { %2666 = vmatpush3.bf16.msra.mxu1 %v3210_v19 }
 0x10b   :  { %v535_v26 = vpack.c.bf16 %v2580_v24, %v2577_v20  ;;  %2667 = vmatprep.subr.bf16.mxu1 %v3211_v22 }
 0x10d   :  { %v2581_v28 = vpop.f32.mrb[12].mxu0  ;;  %2496 = vmatmul.mubr.msk.bf16.gmra.mrb[12].mxu1 %vm567_vm1, %v535_v26  ;;  %v3214_v26 = vld [vmem:[%s4561_s5 + $0x28] sm:$0xff]  }
 0x10e   :  { %v2582_v29 = vpop.f32.mrb[13].mxu0  ;;  %685 = vmatprep.mubr.bf16.mxu1 %v3304_v47  ;;  %2668 = vmatpush3.bf16.msra.mxu1 %v3212_v25 }
 0x10f   :  { %v2583_v30 = vadd.f32 %v2582_v29, %v2581_v28  ;;  %v2584_v31 = vpop.f32.mrb[14].mxu0  ;;  %2669 = vmatprep.subr.bf16.mxu1 %v3213_v27 }
 0x110   :  { %v2585_v32 = vpop.f32.mrb[15].mxu0 }
 0x111   :  { %v2586_v33 = vadd.f32 %v2585_v32, %v2584_v31  ;;  %v3215_v31 = vld [vmem:[%s4561_s5 + $0x70] sm:$0xff]  }
 0x112   :  { %2670 = vmatpush3.bf16.msra.mxu1 %v3214_v26  ;;  %v3216_v32 = vld [vmem:[%s4561_s5 + $0x30] sm:$0xff]  }
 0x113   :  { %v536_v34 = vpack.c.bf16 %v2586_v33, %v2583_v30  ;;  %2671 = vmatprep.subr.bf16.mxu1 %v3215_v31 }
 0x115   :  { %v2587_v35 = vpop.f32.mrb[16].mxu0  ;;  %2497 = vmatmul.mubr.msk.bf16.gmra.mrb[16].mxu1 %vm567_vm1, %v536_v34 }
 0x116   :  { %v2588_v36 = vpop.f32.mrb[17].mxu0  ;;  %695 = vmatprep.mubr.bf16.mxu1 %v3304_v47  ;;  %2672 = vmatpush3.bf16.msra.mxu1 %v3216_v32 }
 0x117   :  { %v2589_v37 = vadd.f32 %v2588_v36, %v2587_v35  ;;  %v2590_v38 = vpop.f32.mrb[18].mxu0  ;;  %v3217_v35 = vld [vmem:[%s4561_s5 + $0x78] sm:$0xff]  }
 0x118   :  { %v2591_v39 = vpop.f32.mrb[19].mxu0  ;;  %2673 = vmatprep.subr.bf16.mxu1 %v3217_v35 }
 0x119   :  { %v2592_v40 = vadd.f32 %v2591_v39, %v2590_v38 }
 0x11b   :  { %v537_v41 = vpack.c.bf16 %v2592_v40, %v2589_v37  ;;  %v3218_v37 = vld [vmem:[%s4561_s5 + $0x38] sm:$0xff]  }
 0x11c   :  { %2674 = vmatpush3.bf16.msra.mxu1 %v3218_v37 }
 0x11d   :  { %v2593_v42 = vpop.f32.mrb[20].mxu0  ;;  %2498 = vmatmul.mubr.msk.bf16.gmra.mrb[20].mxu1 %vm567_vm1, %v537_v41 }
 0x11e   :  { %v2594_v43 = vpop.f32.mrb[21].mxu0  ;;  %705 = vmatprep.mubr.bf16.mxu1 %v3304_v47 }
 0x11f   :  { %v2595_v44 = vadd.f32 %v2594_v43, %v2593_v42  ;;  %v2596_v45 = vpop.f32.mrb[22].mxu0 }
 0x120   :  { %v2597_v46 = vpop.f32.mrb[23].mxu0 }
 0x121   :  { %v2598_v48 = vadd.f32 %v2597_v46, %v2596_v45 }
 0x123   :  { %v538_v49 = vpack.c.bf16 %v2598_v48, %v2595_v44 }
 0x125   :  { %v2599_v50 = vpop.f32.mrb[24].mxu0  ;;  %2499 = vmatmul.mubr.msk.bf16.gmra.mrb[24].mxu1 %vm567_vm1, %v538_v49 }
 0x126   :  { %v2600_v51 = vpop.f32.mrb[25].mxu0  ;;  %715 = vmatprep.mubr.bf16.mxu1 %v3304_v47 }
 0x127   :  { %v2601_v52 = vadd.f32 %v2600_v51, %v2599_v50  ;;  %v2602_v53 = vpop.f32.mrb[26].mxu0 }
 0x128   :  { %v2603_v54 = vpop.f32.mrb[27].mxu0 }
 0x129   :  { %v2604_v55 = vadd.f32 %v2603_v54, %v2602_v53 }
 0x12b   :  { %v539_v56 = vpack.c.bf16 %v2604_v55, %v2601_v52 }
 0x12d   :  { %v2605_v57 = vpop.f32.mrb[28].mxu0  ;;  %2500 = vmatmul.mubr.msk.bf16.gmra.mrb[28].mxu1 %vm567_vm1, %v539_v56 }
 0x12e   :  { %v2606_v58 = vpop.f32.mrb[29].mxu0  ;;  %725 = vmatprep.mubr.bf16.mxu1 %v3304_v47 }
 0x12f   :  { %v2607_v59 = vadd.f32 %v2606_v58, %v2605_v57  ;;  %v2608_v60 = vpop.f32.mrb[30].mxu0  ;;  %v552_v58 = vlaneseq }
 0x130   :  { %v2609_v61 = vpop.f32.mrb[31].mxu0 }
 0x131   :  { %v2610_v62 = vadd.f32 %v2609_v61, %v2608_v60  ;;  %v550_v61 = vld [vmem:[%s4562_s4] sm:$0x3] }
 0x133   :  { %v540_v63 = vpack.c.bf16 %v2610_v62, %v2607_v59  ;;  %v553_v59 = vshrl.u32 %v552_v58, 7 }
 0x135   :  { %v2611_v0 = vpop.f32.mrb[32].mxu0  ;;  %2501 = vmatmul.mubr.msk.bf16.gmra.mrb[32].mxu1 %vm567_vm1, %v540_v63  ;;  %v3627_v60 = vsub.s32 0, %v553_v59  ;;  %v558_v62 = vsub.s32 1, %v553_v59 }
 0x136   :  { %v2612_v2 = vpop.f32.mrb[33].mxu0  ;;  %735 = vmatprep.mubr.bf16.mxu1 %v3304_v47 }
 0x137   :  { %v2613_v3 = vadd.f32 %v2612_v2, %v2611_v0  ;;  %v2614_v4 = vpop.f32.mrb[34].mxu0  ;;  %v3633_v63 = vrot.slane %v550_v61, %v3627_v60  ;;  %v3635_v0 = vrot.slane %v550_v61, %v558_v62 }
 0x138   :  { %v2615_v5 = vpop.f32.mrb[35].mxu0 }
 0x139   :  { %v2616_v7 = vadd.f32 %v2615_v5, %v2614_v4 }
 0x13b   :  { %v541_v8 = vpack.c.bf16 %v2616_v7, %v2613_v3 }
 0x13d   :  { %v2617_v9 = vpop.f32.mrb[36].mxu0  ;;  %2502 = vmatmul.mubr.msk.bf16.gmra.mrb[36].mxu1 %vm567_vm1, %v541_v8 }
 0x13e   :  { %v2618_v10 = vpop.f32.mrb[37].mxu0  ;;  %745 = vmatprep.mubr.bf16.mxu1 %v3304_v47 }
 0x13f   :  { %v2619_v11 = vadd.f32 %v2618_v10, %v2617_v9  ;;  %v2620_v13 = vpop.f32.mrb[38].mxu0 }
 0x140   :  { %v2621_v14 = vpop.f32.mrb[39].mxu0 }
 0x141   :  { %v2622_v15 = vadd.f32 %v2621_v14, %v2620_v13 }
 0x143   :  { %v542_v16 = vpack.c.bf16 %v2622_v15, %v2619_v11 }
 0x145   :  { %v2623_v17 = vpop.f32.mrb[40].mxu0  ;;  %2503 = vmatmul.mubr.msk.bf16.gmra.mrb[40].mxu1 %vm567_vm1, %v542_v16 }
 0x146   :  { %v2624_v18 = vpop.f32.mrb[41].mxu0  ;;  %755 = vmatprep.mubr.bf16.mxu1 %v3304_v47 }
 0x147   :  { %v2625_v19 = vadd.f32 %v2624_v18, %v2623_v17  ;;  %v2626_v20 = vpop.f32.mrb[42].mxu0 }
 0x148   :  { %v2627_v21 = vpop.f32.mrb[43].mxu0 }
 0x149   :  { %v2628_v22 = vadd.f32 %v2627_v21, %v2626_v20 }
 0x14b   :  { %v543_v23 = vpack.c.bf16 %v2628_v22, %v2625_v19 }
 0x14d   :  { %v2629_v24 = vpop.f32.mrb[44].mxu0  ;;  %2504 = vmatmul.mubr.msk.bf16.gmra.mrb[44].mxu1 %vm567_vm1, %v543_v23 }
 0x14e   :  { %v2630_v25 = vpop.f32.mrb[45].mxu0  ;;  %765 = vmatprep.mubr.bf16.mxu1 %v3304_v47 }
 0x14f   :  { %v2631_v27 = vadd.f32 %v2630_v25, %v2629_v24  ;;  %v2632_v28 = vpop.f32.mrb[46].mxu0 }
 0x150   :  { %v2633_v29 = vpop.f32.mrb[47].mxu0 }
 0x151   :  { %v2634_v30 = vadd.f32 %v2633_v29, %v2632_v28 }
 0x153   :  { %v544_v33 = vpack.c.bf16 %v2634_v30, %v2631_v27 }
 0x155   :  { %v2635_v34 = vpop.f32.mrb[48].mxu0  ;;  %2505 = vmatmul.mubr.msk.bf16.gmra.mrb[48].mxu1 %vm567_vm1, %v544_v33 }
 0x156   :  { %v2636_v36 = vpop.f32.mrb[49].mxu0  ;;  %775 = vmatprep.mubr.bf16.mxu1 %v3304_v47 }
 0x157   :  { %v2637_v38 = vadd.f32 %v2636_v36, %v2635_v34  ;;  %v2638_v39 = vpop.f32.mrb[50].mxu0 }
 0x158   :  { %v2639_v40 = vpop.f32.mrb[51].mxu0 }
 0x159   :  { %v2640_v41 = vadd.f32 %v2639_v40, %v2638_v39 }
 0x15b   :  { %v545_v42 = vpack.c.bf16 %v2640_v41, %v2637_v38 }
 0x15d   :  { %v2641_v43 = vpop.f32.mrb[52].mxu0  ;;  %2506 = vmatmul.mubr.msk.bf16.gmra.mrb[52].mxu1 %vm567_vm1, %v545_v42 }
 0x15e   :  { %v2642_v44 = vpop.f32.mrb[53].mxu0  ;;  %785 = vmatprep.mubr.bf16.mxu1 %v3304_v47 }
 0x15f   :  { %v2643_v45 = vadd.f32 %v2642_v44, %v2641_v43  ;;  %v2644_v46 = vpop.f32.mrb[54].mxu0 }
 0x160   :  { %v2645_v48 = vpop.f32.mrb[55].mxu0 }
 0x161   :  { %v2646_v49 = vadd.f32 %v2645_v48, %v2644_v46 }
 0x163   :  { %v546_v50 = vpack.c.bf16 %v2646_v49, %v2643_v45 }
 0x165   :  { %v2647_v51 = vpop.f32.mrb[56].mxu0  ;;  %2507 = vmatmul.mubr.msk.bf16.gmra.mrb[56].mxu1 %vm567_vm1, %v546_v50 }
 0x166   :  { %v2648_v52 = vpop.f32.mrb[57].mxu0  ;;  %795 = vmatprep.mubr.bf16.mxu1 %v3304_v47 }
 0x167   :  { %v2649_v53 = vadd.f32 %v2648_v52, %v2647_v51  ;;  %v2650_v54 = vpop.f32.mrb[58].mxu0 }
 0x168   :  { %v2651_v55 = vpop.f32.mrb[59].mxu0 }
 0x169   :  { %v2652_v56 = vadd.f32 %v2651_v55, %v2650_v54 }
 0x16b   :  { %v547_v57 = vpack.c.bf16 %v2652_v56, %v2649_v53 }
 0x16d   :  { %2508 = vmatmul.mubr.msk.bf16.gmra.mrb[60].mxu1 %vm567_vm1, %v547_v57 }
 0x16e   :  { %805 = vmatprep.mubr.bf16.mxu1 %v3304_v47 }
 0x175   :  { %2509 = vmatmul.mubr.msk.bf16.gmra.mrb[64].mxu1 %vm567_vm1, %v548_v12 }
 0x1d0   :  { %v657_v47 = vpop.f32.mrb[4].mxu1 }
 0x1d1   :  { %v658_v2 = vadd.f32 %v657_v47, %v3633_v63  ;;  %v659_v1 = vpop.f32.mrb[5].mxu1 }
 0x1d2   :  { %v660_v6 = vadd.f32 %v659_v1, %v3635_v0  ;;  %v661_v12 = vpop.f32.mrb[6].mxu1 }
 0x1d3   :  { %v662_v3 = vadd.f32 %v661_v12, %v3633_v63  ;;  %v663_v4 = vpop.f32.mrb[7].mxu1  ;;  %v816_v7 = vmax.f32 %v658_v2, 0.0 }
 0x1d4   :  { %v664_v5 = vadd.f32 %v663_v4, %v3635_v0  ;;  %v817_v9 = vmax.f32 %v660_v6, 0.0 }
 0x1d5   :  { %v818_v8 = vmax.f32 %v662_v3, 0.0 }
 0x1d6   :  { %v819_v10 = vmax.f32 %v664_v5, 0.0 }
 0x1d7   :  { %v880_v11 = vpack.c.bf16 %v818_v8, %v816_v7 }
 0x1d8   :  { %v881_v13 = vpack.c.bf16 %v819_v10, %v817_v9  ;;  %v667_v14 = vpop.f32.mrb[8].mxu1 }
 0x1d9   :  { %v668_v15 = vadd.f32 %v667_v14, %v3633_v63  ;;  %v669_v16 = vpop.f32.mrb[9].mxu1 }
 0x1da   :  { %v670_v17 = vadd.f32 %v669_v16, %v3635_v0  ;;  %v671_v18 = vpop.f32.mrb[10].mxu1  ;;  %1072 = vmatprep.mubr.bf16.mxu1 %v881_v13 }
 0x1db   :  { %v672_v19 = vadd.f32 %v671_v18, %v3633_v63  ;;  %v673_v20 = vpop.f32.mrb[11].mxu1  ;;  %1073 = vmatmul.mubr.bf16.vlgmr.msra.gmra.mrb[68].mxu1 %v880_v11  ;;  %v820_v22 = vmax.f32 %v668_v15, 0.0 }
 0x1dc   :  { %v674_v21 = vadd.f32 %v673_v20, %v3635_v0  ;;  %v821_v24 = vmax.f32 %v670_v17, 0.0 }
 0x1dd   :  { %v822_v23 = vmax.f32 %v672_v19, 0.0 }
 0x1de   :  { %v823_v25 = vmax.f32 %v674_v21, 0.0 }
 0x1df   :  { %v882_v26 = vpack.c.bf16 %v822_v23, %v820_v22 }
 0x1e0   :  { %v883_v27 = vpack.c.bf16 %v823_v25, %v821_v24  ;;  %v677_v28 = vpop.f32.mrb[12].mxu1 }
 0x1e1   :  { %v678_v29 = vadd.f32 %v677_v28, %v3633_v63  ;;  %v679_v30 = vpop.f32.mrb[13].mxu1 }
 0x1e2   :  { %v680_v31 = vadd.f32 %v679_v30, %v3635_v0  ;;  %v681_v32 = vpop.f32.mrb[14].mxu1  ;;  %1080 = vmatprep.mubr.bf16.mxu1 %v883_v27 }
 0x1e3   :  { %v682_v33 = vadd.f32 %v681_v32, %v3633_v63  ;;  %v683_v34 = vpop.f32.mrb[15].mxu1  ;;  %1081 = vmatmul.mubr.bf16.gmra.mrb[72].mxu1 %v882_v26  ;;  %v824_v36 = vmax.f32 %v678_v29, 0.0 }
 0x1e4   :  { %v684_v35 = vadd.f32 %v683_v34, %v3635_v0  ;;  %v825_v38 = vmax.f32 %v680_v31, 0.0 }
 0x1e5   :  { %v826_v37 = vmax.f32 %v682_v33, 0.0 }
 0x1e6   :  { %v827_v39 = vmax.f32 %v684_v35, 0.0 }
 0x1e7   :  { %v884_v40 = vpack.c.bf16 %v826_v37, %v824_v36 }
 0x1e8   :  { %v885_v41 = vpack.c.bf16 %v827_v39, %v825_v38  ;;  %v687_v42 = vpop.f32.mrb[16].mxu1 }
 0x1e9   :  { %v688_v43 = vadd.f32 %v687_v42, %v3633_v63  ;;  %v689_v44 = vpop.f32.mrb[17].mxu1 }
 0x1ea   :  { %v690_v45 = vadd.f32 %v689_v44, %v3635_v0  ;;  %v691_v46 = vpop.f32.mrb[18].mxu1  ;;  %1088 = vmatprep.mubr.bf16.mxu1 %v885_v41 }
 0x1eb   :  { %v692_v48 = vadd.f32 %v691_v46, %v3633_v63  ;;  %v693_v49 = vpop.f32.mrb[19].mxu1  ;;  %1089 = vmatmul.mubr.bf16.gmra.mrb[76].mxu1 %v884_v40  ;;  %v828_v51 = vmax.f32 %v688_v43, 0.0 }
 0x1ec   :  { %v694_v50 = vadd.f32 %v693_v49, %v3635_v0  ;;  %v829_v53 = vmax.f32 %v690_v45, 0.0 }
 0x1ed   :  { %v830_v52 = vmax.f32 %v692_v48, 0.0 }
 0x1ee   :  { %v831_v54 = vmax.f32 %v694_v50, 0.0 }
 0x1ef   :  { %v886_v55 = vpack.c.bf16 %v830_v52, %v828_v51 }
 0x1f0   :  { %v887_v56 = vpack.c.bf16 %v831_v54, %v829_v53  ;;  %v697_v57 = vpop.f32.mrb[20].mxu1 }
 0x1f1   :  { %v698_v58 = vadd.f32 %v697_v57, %v3633_v63  ;;  %v699_v59 = vpop.f32.mrb[21].mxu1 }
 0x1f2   :  { %v700_v61 = vadd.f32 %v699_v59, %v3635_v0  ;;  %v701_v62 = vpop.f32.mrb[22].mxu1  ;;  %1096 = vmatprep.mubr.bf16.mxu1 %v887_v56 }
 0x1f3   :  { %v702_v47 = vadd.f32 %v701_v62, %v3633_v63  ;;  %v703_v2 = vpop.f32.mrb[23].mxu1  ;;  %1097 = vmatmul.mubr.bf16.gmra.mrb[80].mxu1 %v886_v55  ;;  %v832_v6 = vmax.f32 %v698_v58, 0.0 }
 0x1f4   :  { %v704_v1 = vadd.f32 %v703_v2, %v3635_v0  ;;  %v833_v3 = vmax.f32 %v700_v61, 0.0 }
 0x1f5   :  { %v834_v12 = vmax.f32 %v702_v47, 0.0 }
 0x1f6   :  { %v835_v4 = vmax.f32 %v704_v1, 0.0 }
 0x1f7   :  { %v888_v5 = vpack.c.bf16 %v834_v12, %v832_v6 }
 0x1f8   :  { %v889_v7 = vpack.c.bf16 %v835_v4, %v833_v3  ;;  %v707_v8 = vpop.f32.mrb[24].mxu1 }
 0x1f9   :  { %v708_v9 = vadd.f32 %v707_v8, %v3633_v63  ;;  %v709_v10 = vpop.f32.mrb[25].mxu1 }
 0x1fa   :  { %v710_v11 = vadd.f32 %v709_v10, %v3635_v0  ;;  %v711_v13 = vpop.f32.mrb[26].mxu1  ;;  %1104 = vmatprep.mubr.bf16.mxu1 %v889_v7 }
 0x1fb   :  { %v712_v14 = vadd.f32 %v711_v13, %v3633_v63  ;;  %v713_v15 = vpop.f32.mrb[27].mxu1  ;;  %1105 = vmatmul.mubr.bf16.gmra.mrb[84].mxu1 %v888_v5  ;;  %v836_v17 = vmax.f32 %v708_v9, 0.0 }
 0x1fc   :  { %v714_v16 = vadd.f32 %v713_v15, %v3635_v0  ;;  %v837_v19 = vmax.f32 %v710_v11, 0.0 }
 0x1fd   :  { %v838_v18 = vmax.f32 %v712_v14, 0.0 }
 0x1fe   :  { %v839_v20 = vmax.f32 %v714_v16, 0.0 }
 0x1ff   :  { %v890_v21 = vpack.c.bf16 %v838_v18, %v836_v17 }
 0x200   :  { %v891_v22 = vpack.c.bf16 %v839_v20, %v837_v19  ;;  %v717_v23 = vpop.f32.mrb[28].mxu1 }
 0x201   :  { %v718_v24 = vadd.f32 %v717_v23, %v3633_v63  ;;  %v719_v25 = vpop.f32.mrb[29].mxu1 }
 0x202   :  { %v720_v26 = vadd.f32 %v719_v25, %v3635_v0  ;;  %v721_v27 = vpop.f32.mrb[30].mxu1  ;;  %1112 = vmatprep.mubr.bf16.mxu1 %v891_v22 }
 0x203   :  { %v722_v28 = vadd.f32 %v721_v27, %v3633_v63  ;;  %v723_v29 = vpop.f32.mrb[31].mxu1  ;;  %1113 = vmatmul.mubr.bf16.gmra.mrb[88].mxu1 %v890_v21  ;;  %v840_v31 = vmax.f32 %v718_v24, 0.0 }
 0x204   :  { %v724_v30 = vadd.f32 %v723_v29, %v3635_v0  ;;  %v841_v33 = vmax.f32 %v720_v26, 0.0 }
 0x205   :  { %v842_v32 = vmax.f32 %v722_v28, 0.0 }
 0x206   :  { %v843_v34 = vmax.f32 %v724_v30, 0.0 }
 0x207   :  { %v892_v35 = vpack.c.bf16 %v842_v32, %v840_v31 }
 0x208   :  { %v893_v36 = vpack.c.bf16 %v843_v34, %v841_v33  ;;  %v727_v37 = vpop.f32.mrb[32].mxu1 }
 0x209   :  { %v728_v38 = vadd.f32 %v727_v37, %v3633_v63  ;;  %v729_v39 = vpop.f32.mrb[33].mxu1 }
 0x20a   :  { %v730_v40 = vadd.f32 %v729_v39, %v3635_v0  ;;  %v731_v41 = vpop.f32.mrb[34].mxu1  ;;  %1120 = vmatprep.mubr.bf16.mxu1 %v893_v36 }
 0x20b   :  { %v732_v42 = vadd.f32 %v731_v41, %v3633_v63  ;;  %v733_v43 = vpop.f32.mrb[35].mxu1  ;;  %1121 = vmatmul.mubr.bf16.gmra.mrb[92].mxu1 %v892_v35  ;;  %v844_v45 = vmax.f32 %v728_v38, 0.0 }
 0x20c   :  { %v734_v44 = vadd.f32 %v733_v43, %v3635_v0  ;;  %v845_v48 = vmax.f32 %v730_v40, 0.0 }
 0x20d   :  { %v846_v46 = vmax.f32 %v732_v42, 0.0 }
 0x20e   :  { %v847_v49 = vmax.f32 %v734_v44, 0.0 }
 0x20f   :  { %v894_v50 = vpack.c.bf16 %v846_v46, %v844_v45 }
 0x210   :  { %v895_v51 = vpack.c.bf16 %v847_v49, %v845_v48  ;;  %v737_v52 = vpop.f32.mrb[36].mxu1 }
 0x211   :  { %v738_v53 = vadd.f32 %v737_v52, %v3633_v63  ;;  %v739_v54 = vpop.f32.mrb[37].mxu1 }
 0x212   :  { %v740_v55 = vadd.f32 %v739_v54, %v3635_v0  ;;  %v741_v56 = vpop.f32.mrb[38].mxu1  ;;  %1128 = vmatprep.mubr.bf16.mxu1 %v895_v51 }
 0x213   :  { %v742_v57 = vadd.f32 %v741_v56, %v3633_v63  ;;  %v743_v58 = vpop.f32.mrb[39].mxu1  ;;  %1129 = vmatmul.mubr.bf16.gmra.mrb[96].mxu1 %v894_v50  ;;  %v848_v61 = vmax.f32 %v738_v53, 0.0 }
 0x214   :  { %v744_v59 = vadd.f32 %v743_v58, %v3635_v0  ;;  %v849_v47 = vmax.f32 %v740_v55, 0.0 }
 0x215   :  { %v850_v62 = vmax.f32 %v742_v57, 0.0 }
 0x216   :  { %v851_v2 = vmax.f32 %v744_v59, 0.0 }
 0x217   :  { %v896_v1 = vpack.c.bf16 %v850_v62, %v848_v61 }
 0x218   :  { %v897_v6 = vpack.c.bf16 %v851_v2, %v849_v47  ;;  %v747_v12 = vpop.f32.mrb[40].mxu1 }
 0x219   :  { %v748_v3 = vadd.f32 %v747_v12, %v3633_v63  ;;  %v749_v4 = vpop.f32.mrb[41].mxu1 }
 0x21a   :  { %v750_v5 = vadd.f32 %v749_v4, %v3635_v0  ;;  %v751_v7 = vpop.f32.mrb[42].mxu1  ;;  %1136 = vmatprep.mubr.bf16.mxu1 %v897_v6 }
 0x21b   :  { %v752_v8 = vadd.f32 %v751_v7, %v3633_v63  ;;  %v753_v9 = vpop.f32.mrb[43].mxu1  ;;  %1137 = vmatmul.mubr.bf16.gmra.mrb[100].mxu1 %v896_v1  ;;  %v852_v11 = vmax.f32 %v748_v3, 0.0 }
 0x21c   :  { %v754_v10 = vadd.f32 %v753_v9, %v3635_v0  ;;  %v853_v14 = vmax.f32 %v750_v5, 0.0 }
 0x21d   :  { %v854_v13 = vmax.f32 %v752_v8, 0.0 }
 0x21e   :  { %v855_v15 = vmax.f32 %v754_v10, 0.0 }
 0x21f   :  { %v898_v16 = vpack.c.bf16 %v854_v13, %v852_v11 }
 0x220   :  { %v899_v17 = vpack.c.bf16 %v855_v15, %v853_v14  ;;  %v757_v18 = vpop.f32.mrb[44].mxu1 }
 0x221   :  { %v758_v19 = vadd.f32 %v757_v18, %v3633_v63  ;;  %v759_v20 = vpop.f32.mrb[45].mxu1 }
 0x222   :  { %v760_v21 = vadd.f32 %v759_v20, %v3635_v0  ;;  %v761_v22 = vpop.f32.mrb[46].mxu1  ;;  %1144 = vmatprep.mubr.bf16.mxu1 %v899_v17 }
 0x223   :  { %v762_v23 = vadd.f32 %v761_v22, %v3633_v63  ;;  %v763_v24 = vpop.f32.mrb[47].mxu1  ;;  %1145 = vmatmul.mubr.bf16.gmra.mrb[104].mxu1 %v898_v16  ;;  %v856_v26 = vmax.f32 %v758_v19, 0.0 }
 0x224   :  { %v764_v25 = vadd.f32 %v763_v24, %v3635_v0  ;;  %v857_v28 = vmax.f32 %v760_v21, 0.0 }
 0x225   :  { %v858_v27 = vmax.f32 %v762_v23, 0.0 }
 0x226   :  { %v859_v29 = vmax.f32 %v764_v25, 0.0 }
 0x227   :  { %v900_v30 = vpack.c.bf16 %v858_v27, %v856_v26 }
 0x228   :  { %v901_v31 = vpack.c.bf16 %v859_v29, %v857_v28  ;;  %v767_v32 = vpop.f32.mrb[48].mxu1 }
 0x229   :  { %v768_v33 = vadd.f32 %v767_v32, %v3633_v63  ;;  %v769_v34 = vpop.f32.mrb[49].mxu1 }
 0x22a   :  { %v770_v35 = vadd.f32 %v769_v34, %v3635_v0  ;;  %v771_v36 = vpop.f32.mrb[50].mxu1  ;;  %1152 = vmatprep.mubr.bf16.mxu1 %v901_v31 }
 0x22b   :  { %v772_v37 = vadd.f32 %v771_v36, %v3633_v63  ;;  %v773_v38 = vpop.f32.mrb[51].mxu1  ;;  %1153 = vmatmul.mubr.bf16.gmra.mrb[108].mxu1 %v900_v30  ;;  %v860_v40 = vmax.f32 %v768_v33, 0.0 }
 0x22c   :  { %v774_v39 = vadd.f32 %v773_v38, %v3635_v0  ;;  %v861_v42 = vmax.f32 %v770_v35, 0.0 }
 0x22d   :  { %v862_v41 = vmax.f32 %v772_v37, 0.0 }
 0x22e   :  { %v863_v43 = vmax.f32 %v774_v39, 0.0 }
 0x22f   :  { %v902_v44 = vpack.c.bf16 %v862_v41, %v860_v40 }
 0x230   :  { %v903_v45 = vpack.c.bf16 %v863_v43, %v861_v42  ;;  %v777_v46 = vpop.f32.mrb[52].mxu1 }
 0x231   :  { %v778_v48 = vadd.f32 %v777_v46, %v3633_v63  ;;  %v779_v49 = vpop.f32.mrb[53].mxu1 }
 0x232   :  { %v780_v50 = vadd.f32 %v779_v49, %v3635_v0  ;;  %v781_v51 = vpop.f32.mrb[54].mxu1  ;;  %1160 = vmatprep.mubr.bf16.mxu1 %v903_v45 }
 0x233   :  { %v782_v52 = vadd.f32 %v781_v51, %v3633_v63  ;;  %v783_v53 = vpop.f32.mrb[55].mxu1  ;;  %1161 = vmatmul.mubr.bf16.gmra.mrb[112].mxu1 %v902_v44  ;;  %v864_v55 = vmax.f32 %v778_v48, 0.0 }
 0x234   :  { %v784_v54 = vadd.f32 %v783_v53, %v3635_v0  ;;  %v865_v57 = vmax.f32 %v780_v50, 0.0 }
 0x235   :  { %v866_v56 = vmax.f32 %v782_v52, 0.0 }
 0x236   :  { %v867_v58 = vmax.f32 %v784_v54, 0.0 }
 0x237   :  { %v904_v59 = vpack.c.bf16 %v866_v56, %v864_v55 }
 0x238   :  { %v905_v61 = vpack.c.bf16 %v867_v58, %v865_v57  ;;  %v787_v62 = vpop.f32.mrb[56].mxu1 }
 0x239   :  { %v788_v47 = vadd.f32 %v787_v62, %v3633_v63  ;;  %v789_v2 = vpop.f32.mrb[57].mxu1 }
 0x23a   :  { %v790_v1 = vadd.f32 %v789_v2, %v3635_v0  ;;  %v791_v6 = vpop.f32.mrb[58].mxu1  ;;  %1168 = vmatprep.mubr.bf16.mxu1 %v905_v61 }
 0x23b   :  { %v792_v12 = vadd.f32 %v791_v6, %v3633_v63  ;;  %v793_v3 = vpop.f32.mrb[59].mxu1  ;;  %1169 = vmatmul.mubr.bf16.gmra.mrb[116].mxu1 %v904_v59  ;;  %v868_v5 = vmax.f32 %v788_v47, 0.0 }
 0x23c   :  { %v794_v4 = vadd.f32 %v793_v3, %v3635_v0  ;;  %v869_v8 = vmax.f32 %v790_v1, 0.0 }
 0x23d   :  { %v870_v7 = vmax.f32 %v792_v12, 0.0 }
 0x23e   :  { %v871_v9 = vmax.f32 %v794_v4, 0.0 }
 0x23f   :  { %v906_v10 = vpack.c.bf16 %v870_v7, %v868_v5 }
 0x240   :  { %v907_v11 = vpack.c.bf16 %v871_v9, %v869_v8  ;;  %v797_v13 = vpop.f32.mrb[60].mxu1 }
 0x241   :  { %v798_v14 = vadd.f32 %v797_v13, %v3633_v63  ;;  %v799_v15 = vpop.f32.mrb[61].mxu1 }
 0x242   :  { %v800_v16 = vadd.f32 %v799_v15, %v3635_v0  ;;  %v801_v17 = vpop.f32.mrb[62].mxu1  ;;  %1176 = vmatprep.mubr.bf16.mxu1 %v907_v11 }
 0x243   :  { %v802_v18 = vadd.f32 %v801_v17, %v3633_v63  ;;  %v803_v19 = vpop.f32.mrb[63].mxu1  ;;  %1177 = vmatmul.mubr.bf16.gmra.mrb[120].mxu1 %v906_v10  ;;  %v872_v21 = vmax.f32 %v798_v14, 0.0 }
 0x244   :  { %v804_v20 = vadd.f32 %v803_v19, %v3635_v0  ;;  %v873_v23 = vmax.f32 %v800_v16, 0.0 }
 0x245   :  { %v874_v22 = vmax.f32 %v802_v18, 0.0 }
 0x246   :  { %v875_v24 = vmax.f32 %v804_v20, 0.0 }
 0x247   :  { %v908_v25 = vpack.c.bf16 %v874_v22, %v872_v21 }
 0x248   :  { %v909_v26 = vpack.c.bf16 %v875_v24, %v873_v23  ;;  %v807_v27 = vpop.f32.mrb[64].mxu1 }
 0x249   :  { %v808_v28 = vadd.f32 %v807_v27, %v3633_v63  ;;  %v809_v29 = vpop.f32.mrb[65].mxu1 }
 0x24a   :  { %v810_v30 = vadd.f32 %v809_v29, %v3635_v0  ;;  %v811_v31 = vpop.f32.mrb[66].mxu1  ;;  %1184 = vmatprep.mubr.bf16.mxu1 %v909_v26 }
 0x24b   :  { %v812_v32 = vadd.f32 %v811_v31, %v3633_v63  ;;  %v813_v33 = vpop.f32.mrb[67].mxu1  ;;  %1185 = vmatmul.mubr.bf16.gmra.mrb[124].mxu1 %v908_v25  ;;  %v876_v35 = vmax.f32 %v808_v28, 0.0 }
 0x24c   :  { %v814_v34 = vadd.f32 %v813_v33, %v3635_v0  ;;  %v877_v37 = vmax.f32 %v810_v30, 0.0 }
 0x24d   :  { %v878_v36 = vmax.f32 %v812_v32, 0.0 }
 0x24e   :  { %v879_v38 = vmax.f32 %v814_v34, 0.0 }
 0x24f   :  { %v910_v39 = vpack.c.bf16 %v878_v36, %v876_v35 }
 0x250   :  { %v911_v40 = vpack.c.bf16 %v879_v38, %v877_v37 }
 0x252   :  { %1192 = vmatprep.mubr.bf16.mxu1 %v911_v40 }
 0x253   :  { %1193 = vmatmul.mubr.bf16.gmra.mrb[128].mxu1 %v910_v39 }
 0x2ae   :  { %v2675_v41 = vpop.f32.mrb[68].mxu1 }
 0x2af   :  { %v2676_v42 = vpop.f32.mrb[69].mxu1 }
 0x2b0   :  { %v3701_v43 = vadd.f32 %v2676_v42, %v2675_v41  ;;  %v2678_v44 = vpop.f32.mrb[70].mxu1 }
 0x2b1   :  { %v2679_v45 = vpop.f32.mrb[71].mxu1 }
 0x2b2   :  { %v2680_v46 = vadd.f32 %v2679_v45, %v2678_v44 }
 0x2b4   :  { %v1201_v63 = vpack.c.bf16 %v2680_v46, %v3701_v43 }
 0x2b6   :  { %v2681_v48 = vpop.f32.mrb[72].mxu1 }
 0x2b7   :  { %v2682_v49 = vpop.f32.mrb[73].mxu1 }
 0x2b8   :  { %v3704_v0 = vadd.f32 %v2682_v49, %v2681_v48  ;;  %v2684_v50 = vpop.f32.mrb[74].mxu1 }
 0x2b9   :  { %v2685_v51 = vpop.f32.mrb[75].mxu1 }
 0x2ba   :  { %v3706_v52 = vadd.f32 %v2685_v51, %v2684_v50 }
 0x2bc   :  { %v1202_v53 = vpack.c.bf16 %v3706_v52, %v3704_v0 }
 0x2be   :  { %v2687_v54 = vpop.f32.mrb[76].mxu1 }
 0x2bf   :  { %v2688_v55 = vpop.f32.mrb[77].mxu1 }
 0x2c0   :  { %v3710_v56 = vadd.f32 %v2688_v55, %v2687_v54  ;;  %v2690_v57 = vpop.f32.mrb[78].mxu1 }
 0x2c1   :  { %v2691_v58 = vpop.f32.mrb[79].mxu1 }
 0x2c2   :  { %v3712_v59 = vadd.f32 %v2691_v58, %v2690_v57 }
 0x2c4   :  { %v1203_v61 = vpack.c.bf16 %v3712_v59, %v3710_v56 }
 0x2c6   :  { %v2693_v62 = vpop.f32.mrb[80].mxu1 }
 0x2c7   :  { %v2694_v47 = vpop.f32.mrb[81].mxu1 }
 0x2c8   :  { %v3716_v2 = vadd.f32 %v2694_v47, %v2693_v62  ;;  %v2696_v1 = vpop.f32.mrb[82].mxu1 }
 0x2c9   :  { %v2697_v6 = vpop.f32.mrb[83].mxu1 }
 0x2ca   :  { %v3718_v12 = vadd.f32 %v2697_v6, %v2696_v1 }
 0x2cc   :  { %v1204_v3 = vpack.c.bf16 %v3718_v12, %v3716_v2 }
 0x2ce   :  { %v2699_v4 = vpop.f32.mrb[84].mxu1 }
 0x2cf   :  { %v2700_v5 = vpop.f32.mrb[85].mxu1 }
 0x2d0   :  { %v3722_v7 = vadd.f32 %v2700_v5, %v2699_v4  ;;  %v2702_v8 = vpop.f32.mrb[86].mxu1 }
 0x2d1   :  { %v2703_v9 = vpop.f32.mrb[87].mxu1 }
 0x2d2   :  { %v3724_v10 = vadd.f32 %v2703_v9, %v2702_v8 }
 0x2d4   :  { %v1205_v11 = vpack.c.bf16 %v3724_v10, %v3722_v7 }
 0x2d6   :  { %v2705_v13 = vpop.f32.mrb[88].mxu1 }
 0x2d7   :  { %v2706_v14 = vpop.f32.mrb[89].mxu1 }
 0x2d8   :  { %v3728_v15 = vadd.f32 %v2706_v14, %v2705_v13  ;;  %v2708_v16 = vpop.f32.mrb[90].mxu1 }
 0x2d9   :  { %v2709_v17 = vpop.f32.mrb[91].mxu1 }
 0x2da   :  { %v3730_v18 = vadd.f32 %v2709_v17, %v2708_v16 }
 0x2dc   :  { %v1206_v19 = vpack.c.bf16 %v3730_v18, %v3728_v15  ;;  %v3241_v15 = vld [vmem:[%s4559_s0] ss:$8 sps:$4 sm:$0xff]   ;;  %v3242_v18 = vld [vmem:[%s4559_s0 + $0x14] ss:$8 sps:$4 sm:$0xff]  }
 0x2de   :  { %v2711_v20 = vpop.f32.mrb[92].mxu1 }
 0x2df   :  { %v2712_v21 = vpop.f32.mrb[93].mxu1 }
 0x2e0   :  { %v3734_v22 = vadd.f32 %v2712_v21, %v2711_v20  ;;  %v2714_v23 = vpop.f32.mrb[94].mxu1 }
 0x2e1   :  { %v2715_v24 = vpop.f32.mrb[95].mxu1 }
 0x2e2   :  { %v3736_v25 = vadd.f32 %v2715_v24, %v2714_v23 }
 0x2e4   :  { %v1207_v26 = vpack.c.bf16 %v3736_v25, %v3734_v22  ;;  %v3244_v22 = vld [vmem:[%s4559_s0 + $0x24] ss:$8 sps:$4 sm:$0xff]   ;;  %v3245_v25 = vld [vmem:[%s4559_s0 + $0x20] ss:$8 sps:$4 sm:$0xff]  }
 0x2e6   :  { %v2717_v27 = vpop.f32.mrb[96].mxu1 }
 0x2e7   :  { %v2718_v28 = vpop.f32.mrb[97].mxu1 }
 0x2e8   :  { %v3740_v29 = vadd.f32 %v2718_v28, %v2717_v27  ;;  %v2720_v30 = vpop.f32.mrb[98].mxu1 }
 0x2e9   :  { %v2721_v31 = vpop.f32.mrb[99].mxu1 }
 0x2ea   :  { %v3742_v32 = vadd.f32 %v2721_v31, %v2720_v30 }
 0x2ec   :  { %v1208_v33 = vpack.c.bf16 %v3742_v32, %v3740_v29  ;;  %v3247_v29 = vld [vmem:[%s4559_s0 + $0x30] ss:$8 sps:$4 sm:$0xff]   ;;  %v3248_v32 = vld [vmem:[%s4559_s0 + $0x44] ss:$8 sps:$4 sm:$0xff]  }
 0x2ee   :  { %v2723_v34 = vpop.f32.mrb[100].mxu1 }
 0x2ef   :  { %v2724_v35 = vpop.f32.mrb[101].mxu1 }
 0x2f0   :  { %v2725_v36 = vadd.f32 %v2724_v35, %v2723_v34  ;;  %v2726_v37 = vpop.f32.mrb[102].mxu1 }
 0x2f1   :  { %v2727_v38 = vpop.f32.mrb[103].mxu1 }
 0x2f2   :  { %v2728_v39 = vadd.f32 %v2727_v38, %v2726_v37  ;;  %v3251_v37 = vld [vmem:[%s4559_s0 + $0x50] ss:$8 sps:$4 sm:$0xff]   ;;  %v3252_v38 = vld [vmem:[%s4559_s0 + $0x64] ss:$8 sps:$4 sm:$0xff]  }
 0x2f4   :  { %v1209_v40 = vpack.c.bf16 %v2728_v39, %v2725_v36  ;;  %v3250_v36 = vld [vmem:[%s4559_s0 + $0x54] ss:$8 sps:$4 sm:$0xff]   ;;  %v3253_v39 = vld [vmem:[%s4559_s0 + $0x60] ss:$8 sps:$4 sm:$0xff]  }
 0x2f6   :  { %v2729_v41 = vpop.f32.mrb[104].mxu1  ;;  %2771 = vmatprep.subr.bf16.mxu0 %v1209_v40  ;;  %v3254_v40 = vld [vmem:[%s4559_s0 + $0x74] ss:$8 sps:$4 sm:$0xff]  }
 0x2f7   :  { %v2730_v42 = vpop.f32.mrb[105].mxu1  ;;  %2772 = vmatpush3.bf16.msra.mxu0 %v1201_v63 }
 0x2f8   :  { %v2731_v43 = vadd.f32 %v2730_v42, %v2729_v41  ;;  %v2732_v44 = vpop.f32.mrb[106].mxu1  ;;  %v3255_v41 = vld [vmem:[%s4559_s0 + $0x70] ss:$8 sps:$4 sm:$0xff]   ;;  %v3256_v42 = vld [vmem:[%s4559_s0 + $0x84] ss:$8 sps:$4 sm:$0xff]  }
 0x2f9   :  { %v2733_v45 = vpop.f32.mrb[107].mxu1 }
 0x2fa   :  { %v2734_v46 = vadd.f32 %v2733_v45, %v2732_v44  ;;  %v3258_v44 = vld [vmem:[%s4559_s0 + $0x94] ss:$8 sps:$4 sm:$0xff]   ;;  %v3259_v45 = vld [vmem:[%s4559_s0 + $0x90] ss:$8 sps:$4 sm:$0xff]  }
 0x2fc   :  { %v1210_v48 = vpack.c.bf16 %v2734_v46, %v2731_v43  ;;  %v3257_v43 = vld [vmem:[%s4559_s0 + $0x80] ss:$8 sps:$4 sm:$0xff]   ;;  %v3260_v46 = vld [vmem:[%s4559_s0 + $0xa4] ss:$8 sps:$4 sm:$0xff]  }
 0x2fe   :  { %v2735_v49 = vpop.f32.mrb[108].mxu1  ;;  %2773 = vmatprep.subr.bf16.mxu0 %v1210_v48  ;;  %v3261_v48 = vld [vmem:[%s4559_s0 + $0xa0] ss:$8 sps:$4 sm:$0xff]  }
 0x2ff   :  { %v2736_v0 = vpop.f32.mrb[109].mxu1  ;;  %2774 = vmatpush3.bf16.msra.mxu0 %v1202_v53 }
 0x300   :  { %v2737_v50 = vadd.f32 %v2736_v0, %v2735_v49  ;;  %v2738_v51 = vpop.f32.mrb[110].mxu1  ;;  %v3262_v49 = vld [vmem:[%s4559_s0 + $0xb4] ss:$8 sps:$4 sm:$0xff]   ;;  %v3263_v0 = vld [vmem:[%s4559_s0 + $0xb0] ss:$8 sps:$4 sm:$0xff]  }
 0x301   :  { %v2739_v52 = vpop.f32.mrb[111].mxu1 }
 0x302   :  { %v2740_v54 = vadd.f32 %v2739_v52, %v2738_v51  ;;  %v3265_v51 = vld [vmem:[%s4559_s0 + $0xc0] ss:$8 sps:$4 sm:$0xff]   ;;  %v3266_v52 = vld [vmem:[%s4559_s0 + $0xd4] ss:$8 sps:$4 sm:$0xff]  }
 0x304   :  { %v1211_v55 = vpack.c.bf16 %v2740_v54, %v2737_v50  ;;  %v3264_v50 = vld [vmem:[%s4559_s0 + $0xc4] ss:$8 sps:$4 sm:$0xff]   ;;  %v3267_v54 = vld [vmem:[%s4559_s0 + $0xd0] ss:$8 sps:$4 sm:$0xff]  }
 0x306   :  { %v2741_v57 = vpop.f32.mrb[112].mxu1  ;;  %2775 = vmatprep.subr.bf16.mxu0 %v1211_v55  ;;  %v3268_v55 = vld [vmem:[%s4559_s0 + $0xe4] ss:$8 sps:$4 sm:$0xff]  }
 0x307   :  { %v2742_v58 = vpop.f32.mrb[113].mxu1  ;;  %2776 = vmatpush3.bf16.msra.mxu0 %v1203_v61 }
 0x308   :  { %v2743_v63 = vadd.f32 %v2742_v58, %v2741_v57  ;;  %v2744_v62 = vpop.f32.mrb[114].mxu1  ;;  %v3269_v57 = vld [vmem:[%s4559_s0 + $0xe0] ss:$8 sps:$4 sm:$0xff]   ;;  %v3270_v58 = vld [vmem:[%s4559_s0 + $0xf4] ss:$8 sps:$4 sm:$0xff]  }
 0x309   :  { %v2745_v47 = vpop.f32.mrb[115].mxu1 }
 0x30a   :  { %v2746_v1 = vadd.f32 %v2745_v47, %v2744_v62  ;;  %v3272_v62 = vld [vmem:[%s4559_s0 + $0x4] ss:$8 sps:$4 sm:$0xff]  }
 0x30c   :  { %v1212_v6 = vpack.c.bf16 %v2746_v1, %v2743_v63  ;;  %v3271_v63 = vld [vmem:[%s4559_s0 + $0xf0] ss:$8 sps:$4 sm:$0xff]  }
 0x30e   :  { %v2747_v4 = vpop.f32.mrb[116].mxu1  ;;  %2777 = vmatprep.subr.bf16.mxu0 %v1212_v6 }
 0x30f   :  { %v2748_v53 = vpop.f32.mrb[117].mxu1  ;;  %2778 = vmatpush3.bf16.msra.mxu0 %v1204_v3 }
 0x310   :  { %v2749_v5 = vadd.f32 %v2748_v53, %v2747_v4  ;;  %v2750_v8 = vpop.f32.mrb[118].mxu1 }
 0x311   :  { %v2751_v9 = vpop.f32.mrb[119].mxu1 }
 0x312   :  { %v2752_v13 = vadd.f32 %v2751_v9, %v2750_v8 }
 0x314   :  { %v1213_v14 = vpack.c.bf16 %v2752_v13, %v2749_v5 }
 0x316   :  { %v2753_v16 = vpop.f32.mrb[120].mxu1  ;;  %2779 = vmatprep.subr.bf16.mxu0 %v1213_v14 }
 0x317   :  { %v2754_v56 = vpop.f32.mrb[121].mxu1  ;;  %2780 = vmatpush3.bf16.msra.mxu0 %v1205_v11 }
 0x318   :  { %v2755_v59 = vadd.f32 %v2754_v56, %v2753_v16  ;;  %v2756_v61 = vpop.f32.mrb[122].mxu1 }
 0x319   :  { %v2757_v17 = vpop.f32.mrb[123].mxu1 }
 0x31a   :  { %v2758_v20 = vadd.f32 %v2757_v17, %v2756_v61 }
 0x31c   :  { %v1214_v21 = vpack.c.bf16 %v2758_v20, %v2755_v59 }
 0x31e   :  { %v2759_v23 = vpop.f32.mrb[124].mxu1  ;;  %2781 = vmatprep.subr.bf16.mxu0 %v1214_v21 }
 0x31f   :  { %v2760_v2 = vpop.f32.mrb[125].mxu1  ;;  %2782 = vmatpush3.bf16.msra.mxu0 %v1206_v19  ;;  %v3243_v19 = vld [vmem:[%s4559_s0 + $0x10] ss:$8 sps:$4 sm:$0xff]  }
 0x320   :  { %v2761_v12 = vadd.f32 %v2760_v2, %v2759_v23  ;;  %v2762_v3 = vpop.f32.mrb[126].mxu1 }
 0x321   :  { %v2763_v24 = vpop.f32.mrb[127].mxu1 }
 0x322   :  { %v2764_v27 = vadd.f32 %v2763_v24, %v2762_v3  ;;  %v3219_v24 = vld [vmem:[%s4564_s7] sm:$0xff]  }
 0x323   :  { %3050 = vmatprep.subr.bf16.mxu1 %v3219_v24 }
 0x324   :  { %v1215_v28 = vpack.c.bf16 %v2764_v27, %v2761_v12  ;;  %v3863_v12 = vld [vmem:[%s4563_s6] ss:$0 sm:$0xff]  ;;  %3051 = vmatpush3.bf16.msra.mxu1 %v3219_v24  ;;  %v3226_v24 = vld [vmem:[%s4564_s7 + $0x38] sm:$0xff]  }
 0x326   :  { %v2765_v30 = vpop.f32.mrb[128].mxu1  ;;  %2783 = vmatprep.subr.bf16.mxu0 %v1215_v28 }
 0x327   :  { %v2766_v7 = vpop.f32.mrb[129].mxu1  ;;  %2784 = vmatpush3.bf16.msra.mxu0 %v1207_v26  ;;  %v3246_v26 = vld [vmem:[%s4559_s0 + $0x34] ss:$8 sps:$4 sm:$0xff]  }
 0x328   :  { %v2767_v10 = vadd.f32 %v2766_v7, %v2765_v30  ;;  %v2768_v11 = vpop.f32.mrb[130].mxu1 }
 0x329   :  { %v2769_v31 = vpop.f32.mrb[131].mxu1 }
 0x32a   :  { %v2770_v34 = vadd.f32 %v2769_v31, %v2768_v11  ;;  %v3220_v11 = vld [vmem:[%s4564_s7 + $0x8] sm:$0xff]  }
 0x32b   :  { %3052 = vmatprep.subr.bf16.mxu1 %v3220_v11 }
 0x32c   :  { %v1216_v35 = vpack.c.bf16 %v2770_v34, %v2767_v10  ;;  %3053 = vmatpush3.bf16.msra.mxu1 %v3220_v11 }
 0x32e   :  { %2785 = vmatprep.subr.bf16.mxu0 %v1216_v35 }
 0x32f   :  { %2786 = vmatpush3.bf16.msra.mxu0 %v1208_v33  ;;  %v3249_v33 = vld [vmem:[%s4559_s0 + $0x40] ss:$8 sps:$4 sm:$0xff]  }
 0x332   :  { %1257 = vmatmul.mubr.bf16.vlgmr.msra.gmra.mrb[60].mxu0 %v3241_v15 }
 0x333   :  { %1264 = vmatprep.mubr.bf16.mxu0 %v3242_v18  ;;  %v3221_v18 = vld [vmem:[%s4564_s7 + $0x10] sm:$0xff]  }
 0x334   :  { %3054 = vmatprep.subr.bf16.mxu1 %v3221_v18 }
 0x335   :  { %3055 = vmatpush3.bf16.msra.mxu1 %v3221_v18 }
 0x33a   :  { %1265 = vmatmul.mubr.bf16.gmra.mrb[64].mxu0 %v3243_v19 }
 0x33b   :  { %1272 = vmatprep.mubr.bf16.mxu0 %v3244_v22 }
 0x342   :  { %1273 = vmatmul.mubr.bf16.gmra.mrb[68].mxu0 %v3245_v25 }
 0x343   :  { %1280 = vmatprep.mubr.bf16.mxu0 %v3246_v26 }
 0x34a   :  { %1281 = vmatmul.mubr.bf16.gmra.mrb[72].mxu0 %v3247_v29 }
 0x34b   :  { %1288 = vmatprep.mubr.bf16.mxu0 %v3248_v32 }
 0x352   :  { %1289 = vmatmul.mubr.bf16.gmra.mrb[76].mxu0 %v3249_v33 }
 0x353   :  { %1296 = vmatprep.mubr.bf16.mxu0 %v3250_v36 }
 0x35a   :  { %1297 = vmatmul.mubr.bf16.gmra.mrb[80].mxu0 %v3251_v37 }
 0x35b   :  { %1304 = vmatprep.mubr.bf16.mxu0 %v3252_v38 }
 0x362   :  { %1305 = vmatmul.mubr.bf16.gmra.mrb[84].mxu0 %v3253_v39  ;;  %v3222_v39 = vld [vmem:[%s4564_s7 + $0x18] sm:$0xff]  }
 0x363   :  { %1312 = vmatprep.mubr.bf16.mxu0 %v3254_v40  ;;  %3056 = vmatprep.subr.bf16.mxu1 %v3222_v39 }
 0x364   :  { %3057 = vmatpush3.bf16.msra.mxu1 %v3222_v39 }
 0x36a   :  { %1313 = vmatmul.mubr.bf16.gmra.mrb[88].mxu0 %v3255_v41 }
 0x36b   :  { %1320 = vmatprep.mubr.bf16.mxu0 %v3256_v42 }
 0x372   :  { %1321 = vmatmul.mubr.bf16.gmra.mrb[92].mxu0 %v3257_v43 }
 0x373   :  { %1328 = vmatprep.mubr.bf16.mxu0 %v3258_v44 }
 0x37a   :  { %1329 = vmatmul.mubr.bf16.gmra.mrb[96].mxu0 %v3259_v45 }
 0x37b   :  { %1336 = vmatprep.mubr.bf16.mxu0 %v3260_v46 }
 0x382   :  { %1337 = vmatmul.mubr.bf16.gmra.mrb[100].mxu0 %v3261_v48 }
 0x383   :  { %1344 = vmatprep.mubr.bf16.mxu0 %v3262_v49 }
 0x38a   :  { %1345 = vmatmul.mubr.bf16.gmra.mrb[104].mxu0 %v3263_v0  ;;  %v3223_v0 = vld [vmem:[%s4564_s7 + $0x20] sm:$0xff]  }
 0x38b   :  { %1352 = vmatprep.mubr.bf16.mxu0 %v3264_v50  ;;  %3058 = vmatprep.subr.bf16.mxu1 %v3223_v0 }
 0x38c   :  { %3059 = vmatpush3.bf16.msra.mxu1 %v3223_v0 }
 0x392   :  { %1353 = vmatmul.mubr.bf16.gmra.mrb[108].mxu0 %v3265_v51 }
 0x393   :  { %1360 = vmatprep.mubr.bf16.mxu0 %v3266_v52 }
 0x39a   :  { %1361 = vmatmul.mubr.bf16.gmra.mrb[112].mxu0 %v3267_v54 }
 0x39b   :  { %1368 = vmatprep.mubr.bf16.mxu0 %v3268_v55 }
 0x3a2   :  { %1369 = vmatmul.mubr.bf16.gmra.mrb[116].mxu0 %v3269_v57 }
 0x3a3   :  { %1376 = vmatprep.mubr.bf16.mxu0 %v3270_v58 }
 0x3aa   :  { %1377 = vmatmul.mubr.bf16.gmra.mrb[120].mxu0 %v3271_v63 }
 0x3ab   :  { %1908 = vmatprep.mubr.bf16.mxu0 %v3272_v62 }
 0x405   :  { %v2787_v47 = vpop.f32.mrb[60].mxu0 }
 0x406   :  { %v2788_v1 = vpop.f32.mrb[61].mxu0 }
 0x407   :  { %v2789_v6 = vadd.f32 %v2788_v1, %v2787_v47  ;;  %v2790_v4 = vpop.f32.mrb[62].mxu0 }
 0x408   :  { %v2791_v53 = vpop.f32.mrb[63].mxu0 }
 0x409   :  { %v2792_v5 = vadd.f32 %v2791_v53, %v2790_v4  ;;  %v1259_v31 = vadd.f32 %v2789_v6, %v3863_v12  ;;  %v3224_v6 = vld [vmem:[%s4564_s7 + $0x28] sm:$0xff]  }
 0x40a   :  { %3060 = vmatprep.subr.bf16.mxu1 %v3224_v6 }
 0x40b   :  { %v1262_v7 = vadd.f32 %v2792_v5, %v3863_v12  ;;  %v3879_v22 = vmax.f32 %v1259_v31, 0.0  ;;  %3061 = vmatpush3.bf16.msra.mxu1 %v3224_v6 }
 0x40d   :  { %v2793_v8 = vpop.f32.mrb[64].mxu0  ;;  %v3874_v35 = vmax.f32 %v1262_v7, 0.0  ;;  %v1458_v41 = vmul.f32 %v3879_v22, %v3879_v22 }
 0x40e   :  { %v2794_v9 = vpop.f32.mrb[65].mxu0 }
 0x40f   :  { %v2795_v13 = vadd.f32 %v2794_v9, %v2793_v8  ;;  %v2796_v14 = vpop.f32.mrb[66].mxu0  ;;  %v1459_v36 = vmul.f32 %v3874_v35, %v3874_v35  ;;  %v1419_v40 = vadd.f32 %v3874_v35, %v3879_v22 }
 0x410   :  { %v2797_v16 = vpop.f32.mrb[67].mxu0 }
 0x411   :  { %v2798_v56 = vadd.f32 %v2797_v16, %v2796_v14  ;;  %v1267_v34 = vadd.f32 %v2795_v13, %v3863_v12  ;;  %v1490_v45 = vadd.f32 %v1459_v36, %v1458_v41 }
 0x413   :  { %v3881_v25 = vmax.f32 %v1267_v34, 0.0  ;;  %v1270_v26 = vadd.f32 %v2798_v56, %v3863_v12  ;;  %v3225_v56 = vld [vmem:[%s4564_s7 + $0x30] sm:$0xff]  }
 0x414   :  { %3062 = vmatprep.subr.bf16.mxu1 %v3225_v56 }
 0x415   :  { %v2799_v59 = vpop.f32.mrb[68].mxu0  ;;  %v1460_v42 = vmul.f32 %v3881_v25, %v3881_v25  ;;  %v3896_v43 = vmax.f32 %v1270_v26, 0.0  ;;  %v1420_v44 = vadd.f32 %v1419_v40, %v3881_v25  ;;  %3063 = vmatpush3.bf16.msra.mxu1 %v3225_v56 }
 0x416   :  { %v2800_v61 = vpop.f32.mrb[69].mxu0  ;;  %3064 = vmatprep.subr.bf16.mxu1 %v3226_v24 }
 0x417   :  { %v2801_v17 = vadd.f32 %v2800_v61, %v2799_v59  ;;  %v2802_v20 = vpop.f32.mrb[70].mxu0  ;;  %v1491_v51 = vadd.f32 %v1490_v45, %v1460_v42  ;;  %v1461_v52 = vmul.f32 %v3896_v43, %v3896_v43  ;;  %v1421_v58 = vadd.f32 %v1420_v44, %v3896_v43 }
 0x418   :  { %v2803_v21 = vpop.f32.mrb[71].mxu0 }
 0x419   :  { %v2804_v23 = vadd.f32 %v2803_v21, %v2802_v20  ;;  %v1275_v37 = vadd.f32 %v2801_v17, %v3863_v12  ;;  %v1492_v53 = vadd.f32 %v1491_v51, %v1461_v52  ;;  %3065 = vmatpush3.bf16.msra.mxu1 %v3226_v24 }
 0x41b   :  { %v3899_v46 = vmax.f32 %v1275_v37, 0.0  ;;  %v1278_v48 = vadd.f32 %v2804_v23, %v3863_v12 }
 0x41d   :  { %v2805_v2 = vpop.f32.mrb[72].mxu0  ;;  %v1462_v62 = vmul.f32 %v3899_v46, %v3899_v46  ;;  %v3911_v47 = vmax.f32 %v1278_v48, 0.0  ;;  %v1422_v4 = vadd.f32 %v1421_v58, %v3899_v46 }
 0x41e   :  { %v2806_v3 = vpop.f32.mrb[73].mxu0 }
 0x41f   :  { %v2807_v27 = vadd.f32 %v2806_v3, %v2805_v2  ;;  %v2808_v28 = vpop.f32.mrb[74].mxu0  ;;  %v1493_v9 = vadd.f32 %v1492_v53, %v1462_v62  ;;  %v1463_v13 = vmul.f32 %v3911_v47, %v3911_v47  ;;  %v1423_v59 = vadd.f32 %v1422_v4, %v3911_v47 }
 0x420   :  { %v2809_v30 = vpop.f32.mrb[75].mxu0 }
 0x421   :  { %v2810_v10 = vadd.f32 %v2809_v30, %v2808_v28  ;;  %v1283_v54 = vadd.f32 %v2807_v27, %v3863_v12  ;;  %v1494_v27 = vadd.f32 %v1493_v9, %v1463_v13 }
 0x423   :  { %v3917_v5 = vmax.f32 %v1283_v54, 0.0  ;;  %v1286_v8 = vadd.f32 %v2810_v10, %v3863_v12 }
 0x425   :  { %v2811_v15 = vpop.f32.mrb[76].mxu0  ;;  %v1464_v17 = vmul.f32 %v3917_v5, %v3917_v5  ;;  %v3929_v20 = vmax.f32 %v1286_v8, 0.0  ;;  %v1424_v2 = vadd.f32 %v1423_v59, %v3917_v5 }
 0x426   :  { %v2812_v19 = vpop.f32.mrb[77].mxu0 }
 0x427   :  { %v2813_v29 = vadd.f32 %v2812_v19, %v2811_v15  ;;  %v2814_v32 = vpop.f32.mrb[78].mxu0  ;;  %v1495_v10 = vadd.f32 %v1494_v27, %v1464_v17  ;;  %v1465_v11 = vmul.f32 %v3929_v20, %v3929_v20  ;;  %v1425_v34 = vadd.f32 %v1424_v2, %v3929_v20 }
 0x428   :  { %v2815_v33 = vpop.f32.mrb[79].mxu0 }
 0x429   :  { %v2816_v38 = vadd.f32 %v2815_v33, %v2814_v32  ;;  %v1291_v14 = vadd.f32 %v2813_v29, %v3863_v12  ;;  %v1496_v32 = vadd.f32 %v1495_v10, %v1465_v11 }
 0x42b   :  { %v3935_v28 = vmax.f32 %v1291_v14, 0.0  ;;  %v1294_v30 = vadd.f32 %v2816_v38, %v3863_v12 }
 0x42d   :  { %v2817_v49 = vpop.f32.mrb[80].mxu0  ;;  %v1466_v15 = vmul.f32 %v3935_v28, %v3935_v28  ;;  %v3944_v18 = vmax.f32 %v1294_v30, 0.0  ;;  %v1426_v26 = vadd.f32 %v1425_v34, %v3935_v28 }
 0x42e   :  { %v2818_v50 = vpop.f32.mrb[81].mxu0 }
 0x42f   :  { %v2819_v55 = vadd.f32 %v2818_v50, %v2817_v49  ;;  %v2820_v57 = vpop.f32.mrb[82].mxu0  ;;  %v1497_v40 = vadd.f32 %v1496_v32, %v1466_v15  ;;  %v1467_v41 = vmul.f32 %v3944_v18, %v3944_v18  ;;  %v1427_v45 = vadd.f32 %v1426_v26, %v3944_v18 }
 0x430   :  { %v2821_v63 = vpop.f32.mrb[83].mxu0 }
 0x431   :  { %v2822_v1 = vadd.f32 %v2821_v63, %v2820_v57  ;;  %v1299_v31 = vadd.f32 %v2819_v55, %v3863_v12  ;;  %v1498_v50 = vadd.f32 %v1497_v40, %v1467_v41 }
 0x433   :  { %v3947_v33 = vmax.f32 %v1299_v31, 0.0  ;;  %v1302_v36 = vadd.f32 %v2822_v1, %v3863_v12 }
 0x435   :  { %v2823_v16 = vpop.f32.mrb[84].mxu0  ;;  %v1468_v48 = vmul.f32 %v3947_v33, %v3947_v33  ;;  %v3956_v49 = vmax.f32 %v1302_v36, 0.0  ;;  %v1428_v0 = vadd.f32 %v1427_v45, %v3947_v33 }
 0x436   :  { %v2824_v61 = vpop.f32.mrb[85].mxu0 }
 0x437   :  { %v2825_v21 = vadd.f32 %v2824_v61, %v2823_v16  ;;  %v2826_v23 = vpop.f32.mrb[86].mxu0  ;;  %v1499_v57 = vadd.f32 %v1498_v50, %v1468_v48  ;;  %v1469_v58 = vmul.f32 %v3956_v49, %v3956_v49  ;;  %v1429_v6 = vadd.f32 %v1428_v0, %v3956_v49 }
 0x438   :  { %v2827_v3 = vpop.f32.mrb[87].mxu0 }
 0x439   :  { %v2828_v7 = vadd.f32 %v2827_v3, %v2826_v23  ;;  %v1307_v42 = vadd.f32 %v2825_v21, %v3863_v12  ;;  %v1500_v14 = vadd.f32 %v1499_v57, %v1469_v58 }
 0x43b   :  { %v3959_v51 = vmax.f32 %v1307_v42, 0.0  ;;  %v1310_v52 = vadd.f32 %v2828_v7, %v3863_v12 }
 0x43d   :  { %v2829_v19 = vpop.f32.mrb[88].mxu0  ;;  %v1470_v53 = vmul.f32 %v3959_v51, %v3959_v51  ;;  %v3968_v8 = vmax.f32 %v1310_v52, 0.0  ;;  %v1430_v13 = vadd.f32 %v1429_v6, %v3959_v51 }
 0x43e   :  { %v2830_v29 = vpop.f32.mrb[89].mxu0 }
 0x43f   :  { %v2831_v37 = vadd.f32 %v2830_v29, %v2829_v19  ;;  %v2832_v38 = vpop.f32.mrb[90].mxu0  ;;  %v1501_v59 = vadd.f32 %v1500_v14, %v1470_v53  ;;  %v1471_v61 = vmul.f32 %v3968_v8, %v3968_v8  ;;  %v1431_v23 = vadd.f32 %v1430_v13, %v3968_v8 }
 0x440   :  { %v2833_v39 = vpop.f32.mrb[91].mxu0 }
 0x441   :  { %v2834_v44 = vadd.f32 %v2833_v39, %v2832_v38  ;;  %v1315_v63 = vadd.f32 %v2831_v37, %v3863_v12  ;;  %v1502_v11 = vadd.f32 %v1501_v59, %v1471_v61 }
 0x443   :  { %v3971_v16 = vmax.f32 %v1315_v63, 0.0  ;;  %v1318_v56 = vadd.f32 %v2834_v44, %v3863_v12 }
 0x445   :  { %v2835_v54 = vpop.f32.mrb[92].mxu0  ;;  %v1472_v3 = vmul.f32 %v3971_v16, %v3971_v16  ;;  %v3980_v24 = vmax.f32 %v1318_v56, 0.0  ;;  %v1432_v7 = vadd.f32 %v1431_v23, %v3971_v16 }
 0x446   :  { %v2836_v55 = vpop.f32.mrb[93].mxu0 }
 0x447   :  { %v2837_v62 = vadd.f32 %v2836_v55, %v2835_v54  ;;  %v2838_v1 = vpop.f32.mrb[94].mxu0  ;;  %v1503_v19 = vadd.f32 %v1502_v11, %v1472_v3  ;;  %v1473_v26 = vmul.f32 %v3980_v24, %v3980_v24  ;;  %v1433_v32 = vadd.f32 %v1432_v7, %v3980_v24 }
 0x448   :  { %v2839_v4 = vpop.f32.mrb[95].mxu0 }
 0x449   :  { %v2840_v9 = vadd.f32 %v2839_v4, %v2838_v1  ;;  %v1323_v17 = vadd.f32 %v2837_v62, %v3863_v12  ;;  %v1504_v41 = vadd.f32 %v1503_v19, %v1473_v26 }
 0x44b   :  { %v3983_v31 = vmax.f32 %v1323_v17, 0.0  ;;  %v1326_v34 = vadd.f32 %v2840_v9, %v3863_v12 }
 0x44d   :  { %v2841_v21 = vpop.f32.mrb[96].mxu0  ;;  %v1474_v36 = vmul.f32 %v3983_v31, %v3983_v31  ;;  %v3992_v37 = vmax.f32 %v1326_v34, 0.0  ;;  %v1434_v39 = vadd.f32 %v1433_v32, %v3983_v31 }
 0x44e   :  { %v2842_v2 = vpop.f32.mrb[97].mxu0 }
 0x44f   :  { %v2843_v27 = vadd.f32 %v2842_v2, %v2841_v21  ;;  %v2844_v30 = vpop.f32.mrb[98].mxu0  ;;  %v1505_v50 = vadd.f32 %v1504_v41, %v1474_v36  ;;  %v1475_v52 = vmul.f32 %v3992_v37, %v3992_v37  ;;  %v1435_v57 = vadd.f32 %v1434_v39, %v3992_v37 }
 0x450   :  { %v2845_v10 = vpop.f32.mrb[99].mxu0 }
 0x451   :  { %v2846_v15 = vadd.f32 %v2845_v10, %v2844_v30  ;;  %v1331_v29 = vadd.f32 %v2843_v27, %v3863_v12  ;;  %v1506_v1 = vadd.f32 %v1505_v50, %v1475_v52 }
 0x453   :  { %v3995_v42 = vmax.f32 %v1331_v29, 0.0  ;;  %v1334_v44 = vadd.f32 %v2846_v15, %v3863_v12 }
 0x455   :  { %v2847_v38 = vpop.f32.mrb[100].mxu0  ;;  %v1476_v58 = vmul.f32 %v3995_v42, %v3995_v42  ;;  %v4004_v63 = vmax.f32 %v1334_v44, 0.0  ;;  %v1436_v62 = vadd.f32 %v1435_v57, %v3995_v42 }
 0x456   :  { %v2848_v40 = vpop.f32.mrb[101].mxu0 }
 0x457   :  { %v2849_v45 = vadd.f32 %v2848_v40, %v2847_v38  ;;  %v2850_v48 = vpop.f32.mrb[102].mxu0  ;;  %v1507_v13 = vadd.f32 %v1506_v1, %v1476_v58  ;;  %v1477_v14 = vmul.f32 %v4004_v63, %v4004_v63  ;;  %v1437_v61 = vadd.f32 %v1436_v62, %v4004_v63 }
 0x458   :  { %v2851_v0 = vpop.f32.mrb[103].mxu0 }
 0x459   :  { %v1339_v54 = vadd.f32 %v2849_v45, %v3863_v12  ;;  %v2852_v55 = vadd.f32 %v2851_v0, %v2850_v48  ;;  %v1508_v27 = vadd.f32 %v1507_v13, %v1477_v14 }
 0x45b   :  { %v4007_v6 = vmax.f32 %v1339_v54, 0.0  ;;  %v1342_v4 = vadd.f32 %v2852_v55, %v3863_v12 }
 0x45d   :  { %v2853_v53 = vpop.f32.mrb[104].mxu0  ;;  %v1478_v21 = vmul.f32 %v4007_v6, %v4007_v6  ;;  %v4015_v23 = vmax.f32 %v1342_v4, 0.0  ;;  %v1438_v30 = vadd.f32 %v1437_v61, %v4007_v6 }
 0x45e   :  { %v2854_v9 = vpop.f32.mrb[105].mxu0 }
 0x45f   :  { %v2855_v56 = vadd.f32 %v2854_v9, %v2853_v53  ;;  %v2856_v59 = vpop.f32.mrb[106].mxu0  ;;  %v1509_v11 = vadd.f32 %v1508_v27, %v1478_v21  ;;  %v1479_v34 = vmul.f32 %v4015_v23, %v4015_v23  ;;  %v1439_v26 = vadd.f32 %v1438_v30, %v4015_v23 }
 0x460   :  { %v2857_v17 = vpop.f32.mrb[107].mxu0 }
 0x461   :  { %v1347_v2 = vadd.f32 %v2855_v56, %v3863_v12  ;;  %v2858_v3 = vadd.f32 %v2857_v17, %v2856_v59  ;;  %v1510_v40 = vadd.f32 %v1509_v11, %v1479_v34 }
 0x463   :  { %v4019_v7 = vmax.f32 %v1347_v2, 0.0  ;;  %v1350_v10 = vadd.f32 %v2858_v3, %v3863_v12 }
 0x465   :  { %v2859_v15 = vpop.f32.mrb[108].mxu0  ;;  %v1480_v29 = vmul.f32 %v4019_v7, %v4019_v7  ;;  %v4027_v32 = vmax.f32 %v1350_v10, 0.0  ;;  %v1440_v41 = vadd.f32 %v1439_v26, %v4019_v7 }
 0x466   :  { %v2860_v19 = vpop.f32.mrb[109].mxu0 }
 0x467   :  { %v2861_v36 = vadd.f32 %v2860_v19, %v2859_v15  ;;  %v2862_v38 = vpop.f32.mrb[110].mxu0  ;;  %v1511_v48 = vadd.f32 %v1510_v40, %v1480_v29  ;;  %v1481_v0 = vmul.f32 %v4027_v32, %v4027_v32  ;;  %v1441_v54 = vadd.f32 %v1440_v41, %v4027_v32 }
 0x468   :  { %v2863_v39 = vpop.f32.mrb[111].mxu0 }
 0x469   :  { %v1355_v44 = vadd.f32 %v2861_v36, %v3863_v12  ;;  %v2864_v45 = vadd.f32 %v2863_v39, %v2862_v38  ;;  %v1512_v1 = vadd.f32 %v1511_v48, %v1481_v0 }
 0x46b   :  { %v4033_v50 = vmax.f32 %v1355_v44, 0.0  ;;  %v1358_v52 = vadd.f32 %v2864_v45, %v3863_v12 }
 0x46d   :  { %v1482_v55 = vmul.f32 %v4033_v50, %v4033_v50  ;;  %v4039_v57 = vmax.f32 %v1358_v52, 0.0  ;;  %v2865_v58 = vpop.f32.mrb[112].mxu0  ;;  %v1442_v4 = vadd.f32 %v1441_v54, %v4033_v50 }
 0x46e   :  { %v2866_v62 = vpop.f32.mrb[113].mxu0 }
 0x46f   :  { %v2867_v53 = vadd.f32 %v2866_v62, %v2865_v58  ;;  %v2868_v9 = vpop.f32.mrb[114].mxu0  ;;  %v1513_v14 = vadd.f32 %v1512_v1, %v1482_v55  ;;  %v1483_v56 = vmul.f32 %v4039_v57, %v4039_v57  ;;  %v1443_v17 = vadd.f32 %v1442_v4, %v4039_v57 }
 0x470   :  { %v2869_v13 = vpop.f32.mrb[115].mxu0 }
 0x471   :  { %v1363_v59 = vadd.f32 %v2867_v53, %v3863_v12  ;;  %v2870_v61 = vadd.f32 %v2869_v13, %v2868_v9  ;;  %v1514_v3 = vadd.f32 %v1513_v14, %v1483_v56 }
 0x473   :  { %v4046_v21 = vmax.f32 %v1363_v59, 0.0  ;;  %v1366_v2 = vadd.f32 %v2870_v61, %v3863_v12 }
 0x475   :  { %v1444_v27 = vadd.f32 %v1443_v17, %v4046_v21  ;;  %v1484_v30 = vmul.f32 %v4046_v21, %v4046_v21  ;;  %v4052_v10 = vmax.f32 %v1366_v2, 0.0  ;;  %v2871_v11 = vpop.f32.mrb[116].mxu0 }
 0x476   :  { %v2872_v34 = vpop.f32.mrb[117].mxu0 }
 0x477   :  { %v1515_v15 = vadd.f32 %v1514_v3, %v1484_v30  ;;  %v1445_v19 = vadd.f32 %v1444_v27, %v4052_v10  ;;  %v1485_v26 = vmul.f32 %v4052_v10, %v4052_v10  ;;  %v2873_v29 = vadd.f32 %v2872_v34, %v2871_v11  ;;  %v2874_v36 = vpop.f32.mrb[118].mxu0 }
 0x478   :  { %v2875_v38 = vpop.f32.mrb[119].mxu0 }
 0x479   :  { %v1516_v39 = vadd.f32 %v1515_v15, %v1485_v26  ;;  %v1371_v40 = vadd.f32 %v2873_v29, %v3863_v12  ;;  %v2876_v41 = vadd.f32 %v2875_v38, %v2874_v36 }
 0x47b   :  { %v4058_v44 = vmax.f32 %v1371_v40, 0.0  ;;  %v1374_v45 = vadd.f32 %v2876_v41, %v3863_v12 }
 0x47d   :  { %v1446_v48 = vadd.f32 %v1445_v19, %v4058_v44  ;;  %v1486_v0 = vmul.f32 %v4058_v44, %v4058_v44  ;;  %v4064_v52 = vmax.f32 %v1374_v45, 0.0  ;;  %v2877_v54 = vpop.f32.mrb[120].mxu0 }
 0x47e   :  { %v2878_v55 = vpop.f32.mrb[121].mxu0 }
 0x47f   :  { %v1517_v58 = vadd.f32 %v1516_v39, %v1486_v0  ;;  %v1447_v62 = vadd.f32 %v1446_v48, %v4064_v52  ;;  %v1487_v1 = vmul.f32 %v4064_v52, %v4064_v52  ;;  %v2879_v4 = vadd.f32 %v2878_v55, %v2877_v54  ;;  %v2880_v53 = vpop.f32.mrb[122].mxu0 }
 0x480   :  { %v2881_v9 = vpop.f32.mrb[123].mxu0 }
 0x481   :  { %v1518_v13 = vadd.f32 %v1517_v58, %v1487_v1  ;;  %v1379_v14 = vadd.f32 %v2879_v4, %v3863_v12  ;;  %v2882_v56 = vadd.f32 %v2881_v9, %v2880_v53  ;;  %v1417_v4 = vld [vmem:[%s4565_s9] sm:$0x1] }
 0x483   :  { %v4070_v59 = vmax.f32 %v1379_v14, 0.0  ;;  %v1382_v61 = vadd.f32 %v2882_v56, %v3863_v12 }
 0x485   :  { %v1448_v17 = vadd.f32 %v1447_v62, %v4070_v59  ;;  %v1488_v2 = vmul.f32 %v4070_v59, %v4070_v59  ;;  %v1416_v3 = vmax.f32 %v1382_v61, 0.0 }
 0x487   :  { %v1519_v27 = vadd.f32 %v1518_v13, %v1488_v2  ;;  %v1449_v30 = vadd.f32 %v1448_v17, %v1416_v3  ;;  %v1489_v11 = vmul.f32 %v1416_v3, %v1416_v3  ;;  %v1418_v13 = vld [vmem:[%s4566_s10] sm:$0x1] }
 0x489   :  { %v1450_v34 = vrot.slane %v1449_v30, 4  ;;  %v1520_v15 = vadd.f32 %v1519_v27, %v1489_v11 }
 0x48b   :  { %v1451_v19 = vadd.f32 %v1450_v34, %v1449_v30  ;;  %v1521_v26 = vrot.slane %v1520_v15, 4 }
 0x48d   :  { %v1452_v29 = vrot.slane %v1451_v19, 2  ;;  %v1522_v36 = vadd.f32 %v1521_v26, %v1520_v15 }
 0x48f   :  { %v1453_v38 = vadd.f32 %v1452_v29, %v1451_v19  ;;  %v1523_v39 = vrot.slane %v1522_v36, 2 }
 0x491   :  { %v1454_v40 = vrot.slane %v1453_v38, 1  ;;  %v1524_v41 = vadd.f32 %v1523_v39, %v1522_v36 }
 0x493   :  { %v1455_v12 = vadd.f32 %v1454_v40, %v1453_v38  ;;  %v1525_v45 = vrot.slane %v1524_v41, 1 }
 0x495   :  { %v1457_v48 = vmul.f32 0.00390625, %v1455_v12  ;;  %v1526_v0 = vadd.f32 %v1525_v45, %v1524_v41 }
 0x497   :  { %v1527_v54 = vmul.f32 0.00390625, %v1526_v0  ;;  %v1528_v55 = vmul.f32 %v1457_v48, %v1457_v48 }
 0x499   :  { %v1529_v58 = vsub.f32 %v1527_v54, %v1528_v55 }
 0x49b   :  { %v1530_v62 = vmax.f32 %v1529_v58, 0.0 }
 0x49d   :  { %v1531_v1 = vadd.f32 1e-05, %v1530_v62 }
 0x49f   :  { %3237 = vrsqrt.f32 %v1531_v1 }
 0x4a9   :  { %v3238_v53 = vpop.eup %3237 }
 0x4aa   :  { %v1533_v9 = vmul.f32 %v3238_v53, %v1417_v4 }
 0x4ac   :  { %v1534_v14 = vmul.f32 %v1533_v9, %v1457_v48  ;;  %v1540_v56 = vrot.slane %v1533_v9, %v3627_v60 }
 0x4ae   :  { %v1535_v61 = vsub.f32 %v1418_v13, %v1534_v14  ;;  %v4083_v17 = vmul.f32 %v1540_v56, %v1416_v3  ;;  %v1542_v2 = vmul.f32 %v1540_v56, %v3879_v22  ;;  %v1543_v27 = vmul.f32 %v1540_v56, %v3874_v35 }
 0x4af   :  { %v1544_v30 = vmul.f32 %v1540_v56, %v3881_v25  ;;  %v1545_v11 = vmul.f32 %v1540_v56, %v3896_v43  ;;  %v1546_v34 = vmul.f32 %v1540_v56, %v3899_v46  ;;  %v1547_v15 = vmul.f32 %v1540_v56, %v3911_v47 }
 0x4b0   :  { %v4092_v19 = vrot.slane %v1535_v61, %v3627_v60  ;;  %v1548_v26 = vmul.f32 %v1540_v56, %v3917_v5  ;;  %v1549_v3 = vmul.f32 %v1540_v56, %v3929_v20  ;;  %v1550_v29 = vmul.f32 %v1540_v56, %v3935_v28 }
 0x4b1   :  { %v1551_v22 = vmul.f32 %v1540_v56, %v3944_v18  ;;  %v1552_v35 = vmul.f32 %v1540_v56, %v3947_v33  ;;  %v1553_v25 = vmul.f32 %v1540_v56, %v3956_v49  ;;  %v1554_v43 = vmul.f32 %v1540_v56, %v3959_v51 }
 0x4b2   :  { %v1555_v46 = vmul.f32 %v1540_v56, %v3968_v8  ;;  %v1556_v47 = vmul.f32 %v1540_v56, %v3971_v16  ;;  %v1557_v36 = vmul.f32 %v1540_v56, %v3980_v24  ;;  %v1558_v5 = vmul.f32 %v1540_v56, %v3983_v31 }
 0x4b3   :  { %v1559_v20 = vmul.f32 %v1540_v56, %v3992_v37  ;;  %v1560_v28 = vmul.f32 %v1540_v56, %v3995_v42  ;;  %v1561_v18 = vmul.f32 %v1540_v56, %v4004_v63  ;;  %v1562_v33 = vmul.f32 %v1540_v56, %v4007_v6 }
 0x4b4   :  { %v1563_v49 = vmul.f32 %v1540_v56, %v4015_v23  ;;  %v1564_v51 = vmul.f32 %v1540_v56, %v4019_v7  ;;  %v1565_v8 = vmul.f32 %v1540_v56, %v4027_v32  ;;  %v1566_v16 = vmul.f32 %v1540_v56, %v4033_v50 }
 0x4b5   :  { %v1567_v24 = vmul.f32 %v1540_v56, %v4039_v57  ;;  %v1568_v31 = vmul.f32 %v1540_v56, %v4046_v21  ;;  %v1569_v37 = vmul.f32 %v1540_v56, %v4052_v10  ;;  %v1570_v42 = vmul.f32 %v1540_v56, %v4058_v44 }
 0x4b6   :  { %v1571_v63 = vmul.f32 %v1540_v56, %v4064_v52  ;;  %v1572_v6 = vmul.f32 %v1540_v56, %v4070_v59  ;;  %v1582_v23 = vadd.f32 %v4092_v19, %v1544_v30  ;;  %v1583_v7 = vadd.f32 %v4092_v19, %v1545_v11 }
 0x4b7   :  { %v1580_v32 = vadd.f32 %v4092_v19, %v1542_v2  ;;  %v1581_v50 = vadd.f32 %v4092_v19, %v1543_v27  ;;  %v1584_v57 = vadd.f32 %v4092_v19, %v1546_v34  ;;  %v1585_v21 = vadd.f32 %v4092_v19, %v1547_v15 }
 0x4b8   :  { %v1613_v38 = vpack.c.bf16 %v1583_v7, %v1582_v23  ;;  %v1586_v10 = vadd.f32 %v4092_v19, %v1548_v26  ;;  %v1587_v44 = vadd.f32 %v4092_v19, %v1549_v3  ;;  %v1588_v52 = vadd.f32 %v4092_v19, %v1550_v29 }
 0x4b9   :  { %v1612_v59 = vpack.c.bf16 %v1581_v50, %v1580_v32  ;;  %v1614_v39 = vpack.c.bf16 %v1585_v21, %v1584_v57  ;;  %v1589_v40 = vadd.f32 %v4092_v19, %v1551_v22  ;;  %v1590_v41 = vadd.f32 %v4092_v19, %v1552_v35 }
 0x4ba   :  { %v1615_v12 = vpack.c.bf16 %v1587_v44, %v1586_v10  ;;  %v1591_v45 = vadd.f32 %v4092_v19, %v1553_v25  ;;  %v1592_v48 = vadd.f32 %v4092_v19, %v1554_v43  ;;  %v1593_v0 = vadd.f32 %v4092_v19, %v1555_v46 }
 0x4bb   :  { %3066 = vmatprep.mubr.bf16.mxu1 %v1612_v59  ;;  %v1616_v54 = vpack.c.bf16 %v1589_v40, %v1588_v52  ;;  %v1594_v55 = vadd.f32 %v4092_v19, %v1556_v47  ;;  %v1595_v58 = vadd.f32 %v4092_v19, %v1557_v36  ;;  %v1596_v62 = vadd.f32 %v4092_v19, %v1558_v5 }
 0x4bc   :  { %3067 = vmatmul.mubr.bf16.vlgmr.msra.gmra.mrb[132].mxu1 %v1613_v38  ;;  %v1617_v1 = vpack.c.bf16 %v1591_v45, %v1590_v41  ;;  %v1618_v4 = vpack.c.bf16 %v1593_v0, %v1592_v48  ;;  %v1597_v53 = vadd.f32 %v4092_v19, %v1559_v20  ;;  %v1598_v9 = vadd.f32 %v4092_v19, %v1560_v28 }
 0x4bd   :  { %3070 = vmatprep.mubr.bf16.mxu1 %v1614_v39  ;;  %v1619_v13 = vpack.c.bf16 %v1595_v58, %v1594_v55  ;;  %v1599_v14 = vadd.f32 %v4092_v19, %v1561_v18  ;;  %v1600_v56 = vadd.f32 %v4092_v19, %v1562_v33  ;;  %v1601_v61 = vadd.f32 %v4092_v19, %v1563_v49 }
 0x4be   :  { %v1620_v2 = vpack.c.bf16 %v1597_v53, %v1596_v62  ;;  %v1602_v27 = vadd.f32 %v4092_v19, %v1564_v51  ;;  %v1603_v30 = vadd.f32 %v4092_v19, %v1565_v8  ;;  %v1604_v11 = vadd.f32 %v4092_v19, %v1566_v16 }
 0x4bf   :  { %v1621_v34 = vpack.c.bf16 %v1599_v14, %v1598_v9  ;;  %v1622_v15 = vpack.c.bf16 %v1601_v61, %v1600_v56  ;;  %v1605_v26 = vadd.f32 %v4092_v19, %v1567_v24  ;;  %v1606_v3 = vadd.f32 %v4092_v19, %v1568_v31 }
 0x4c0   :  { %v1623_v29 = vpack.c.bf16 %v1603_v30, %v1602_v27  ;;  %v1607_v22 = vadd.f32 %v4092_v19, %v1569_v37  ;;  %v1608_v35 = vadd.f32 %v4092_v19, %v1570_v42  ;;  %v1609_v25 = vadd.f32 %v4092_v19, %v1571_v63 }
 0x4c1   :  { %v1624_v43 = vpack.c.bf16 %v1605_v26, %v1604_v11  ;;  %v1610_v46 = vadd.f32 %v4092_v19, %v1572_v6  ;;  %v1611_v47 = vadd.f32 %v4092_v19, %v4083_v17  ;;  %v3273_v11 = vld [vmem:[%s4559_s0] ss:$8 sps:$4 sm:$0xff]   ;;  %v3276_v26 = vld [vmem:[%s4559_s0 + $0x24] ss:$8 sps:$4 sm:$0xff]  }
 0x4c2   :  { %v1625_v36 = vpack.c.bf16 %v1607_v22, %v1606_v3  ;;  %v1626_v5 = vpack.c.bf16 %v1609_v25, %v1608_v35  ;;  %v3277_v3 = vld [vmem:[%s4559_s0 + $0x20] ss:$8 sps:$4 sm:$0xff]   ;;  %v3279_v22 = vld [vmem:[%s4559_s0 + $0x30] ss:$8 sps:$4 sm:$0xff]   ;;  %v3280_v35 = vld [vmem:[%s4559_s0 + $0x44] ss:$8 sps:$4 sm:$0xff]  }
 0x4c3   :  { %v1627_v20 = vpack.c.bf16 %v1611_v47, %v1610_v46  ;;  %v3281_v25 = vld [vmem:[%s4559_s0 + $0x40] ss:$8 sps:$4 sm:$0xff]   ;;  %v3283_v46 = vld [vmem:[%s4559_s0 + $0x50] ss:$8 sps:$4 sm:$0xff]   ;;  %v3284_v47 = vld [vmem:[%s4559_s0 + $0x64] ss:$8 sps:$4 sm:$0xff]  }
 0x4c4   :  { %3071 = vmatmul.mubr.bf16.gmra.mrb[136].mxu1 %v1615_v12 }
 0x4c5   :  { %3074 = vmatprep.mubr.bf16.mxu1 %v1616_v54 }
 0x4cc   :  { %3075 = vmatmul.mubr.bf16.gmra.mrb[140].mxu1 %v1617_v1 }
 0x4cd   :  { %3078 = vmatprep.mubr.bf16.mxu1 %v1618_v4 }
 0x4d4   :  { %3079 = vmatmul.mubr.bf16.gmra.mrb[144].mxu1 %v1619_v13 }
 0x4d5   :  { %3082 = vmatprep.mubr.bf16.mxu1 %v1620_v2 }
 0x4dc   :  { %3083 = vmatmul.mubr.bf16.gmra.mrb[148].mxu1 %v1621_v34  ;;  %v3274_v34 = vld [vmem:[%s4559_s0 + $0x14] ss:$8 sps:$4 sm:$0xff]  }
 0x4dd   :  { %3086 = vmatprep.mubr.bf16.mxu1 %v1622_v15  ;;  %v3275_v15 = vld [vmem:[%s4559_s0 + $0x10] ss:$8 sps:$4 sm:$0xff]  }
 0x4e4   :  { %3087 = vmatmul.mubr.bf16.gmra.mrb[152].mxu1 %v1623_v29  ;;  %v3278_v29 = vld [vmem:[%s4559_s0 + $0x34] ss:$8 sps:$4 sm:$0xff]  }
 0x4e5   :  { %3090 = vmatprep.mubr.bf16.mxu1 %v1624_v43  ;;  %v3282_v43 = vld [vmem:[%s4559_s0 + $0x54] ss:$8 sps:$4 sm:$0xff]  }
 0x4ec   :  { %3091 = vmatmul.mubr.bf16.gmra.mrb[156].mxu1 %v1625_v36  ;;  %v3285_v36 = vld [vmem:[%s4559_s0 + $0x60] ss:$8 sps:$4 sm:$0xff]  }
 0x4ed   :  { %3094 = vmatprep.mubr.bf16.mxu1 %v1626_v5  ;;  %v3286_v5 = vld [vmem:[%s4559_s0 + $0x74] ss:$8 sps:$4 sm:$0xff]  }
 0x4f4   :  { %3095 = vmatmul.mubr.bf16.gmra.mrb[160].mxu1 %v1627_v20  ;;  %v3287_v20 = vld [vmem:[%s4559_s0 + $0x70] ss:$8 sps:$4 sm:$0xff]  }
 0x58f   :  { %v3068_v28 = vpop.f32.mrb[132].mxu1 }
 0x590   :  { %v1726_v18 = vpop.f32.mrb[133].mxu1 }
 0x591   :  { %v3069_v33 = vpop.f32.mrb[134].mxu1 }
 0x592   :  { %v1854_v17 = vpack.c.bf16 %v3069_v33, %v3068_v28  ;;  %v1729_v19 = vpop.f32.mrb[135].mxu1  ;;  %v3288_v28 = vld [vmem:[%s4559_s0 + $0x84] ss:$8 sps:$4 sm:$0xff]   ;;  %v3290_v33 = vld [vmem:[%s4559_s0 + $0x94] ss:$8 sps:$4 sm:$0xff]  }
 0x593   :  { %v1853_v49 = vpack.c.bf16 %v1729_v19, %v1726_v18  ;;  %v3289_v18 = vld [vmem:[%s4559_s0 + $0x80] ss:$8 sps:$4 sm:$0xff]   ;;  %v3292_v19 = vld [vmem:[%s4559_s0 + $0xa4] ss:$8 sps:$4 sm:$0xff]  }
 0x597   :  { %v3072_v51 = vpop.f32.mrb[136].mxu1 }
 0x598   :  { %v1742_v8 = vpop.f32.mrb[137].mxu1 }
 0x599   :  { %v3073_v16 = vpop.f32.mrb[138].mxu1 }
 0x59a   :  { %v1856_v24 = vpack.c.bf16 %v3073_v16, %v3072_v51  ;;  %v1745_v31 = vpop.f32.mrb[139].mxu1  ;;  %v3294_v51 = vld [vmem:[%s4559_s0 + $0xb4] ss:$8 sps:$4 sm:$0xff]   ;;  %v3296_v16 = vld [vmem:[%s4559_s0 + $0xc4] ss:$8 sps:$4 sm:$0xff]  }
 0x59b   :  { %v1855_v37 = vpack.c.bf16 %v1745_v31, %v1742_v8  ;;  %v3295_v8 = vld [vmem:[%s4559_s0 + $0xb0] ss:$8 sps:$4 sm:$0xff]   ;;  %v3298_v31 = vld [vmem:[%s4559_s0 + $0xd4] ss:$8 sps:$4 sm:$0xff]  }
 0x59f   :  { %v3076_v42 = vpop.f32.mrb[140].mxu1 }
 0x5a0   :  { %v1758_v63 = vpop.f32.mrb[141].mxu1 }
 0x5a1   :  { %v3077_v6 = vpop.f32.mrb[142].mxu1 }
 0x5a2   :  { %v1858_v23 = vpack.c.bf16 %v3077_v6, %v3076_v42  ;;  %v1761_v7 = vpop.f32.mrb[143].mxu1  ;;  %v3300_v42 = vld [vmem:[%s4559_s0 + $0xe4] ss:$8 sps:$4 sm:$0xff]   ;;  %v3302_v6 = vld [vmem:[%s4559_s0 + $0xf4] ss:$8 sps:$4 sm:$0xff]  }
 0x5a3   :  { %v1857_v32 = vpack.c.bf16 %v1761_v7, %v1758_v63  ;;  %v3301_v63 = vld [vmem:[%s4559_s0 + $0xe0] ss:$8 sps:$4 sm:$0xff]  }
 0x5a7   :  { %v3080_v50 = vpop.f32.mrb[144].mxu1 }
 0x5a8   :  { %v1774_v57 = vpop.f32.mrb[145].mxu1 }
 0x5a9   :  { %v3081_v21 = vpop.f32.mrb[146].mxu1 }
 0x5aa   :  { %v1860_v38 = vpack.c.bf16 %v3081_v21, %v3080_v50  ;;  %v1777_v10 = vpop.f32.mrb[147].mxu1 }
 0x5ab   :  { %v1859_v44 = vpack.c.bf16 %v1777_v10, %v1774_v57 }
 0x5af   :  { %v3084_v52 = vpop.f32.mrb[148].mxu1 }
 0x5b0   :  { %v1790_v59 = vpop.f32.mrb[149].mxu1 }
 0x5b1   :  { %v3085_v39 = vpop.f32.mrb[150].mxu1 }
 0x5b2   :  { %v1862_v40 = vpack.c.bf16 %v3085_v39, %v3084_v52  ;;  %v1793_v41 = vpop.f32.mrb[151].mxu1 }
 0x5b3   :  { %v1861_v12 = vpack.c.bf16 %v1793_v41, %v1790_v59 }
 0x5b5   :  { %2907 = vmatprep.subr.bf16.mxu0 %v1861_v12 }
 0x5b6   :  { %2908 = vmatpush3.bf16.msra.mxu0 %v1853_v49  ;;  %v3293_v49 = vld [vmem:[%s4559_s0 + $0xa0] ss:$8 sps:$4 sm:$0xff]  }
 0x5b7   :  { %v3088_v45 = vpop.f32.mrb[152].mxu1  ;;  %2909 = vmatprep.subr.bf16.mxu0 %v1862_v40 }
 0x5b8   :  { %v1806_v48 = vpop.f32.mrb[153].mxu1 }
 0x5b9   :  { %v3089_v0 = vpop.f32.mrb[154].mxu1 }
 0x5ba   :  { %v1864_v54 = vpack.c.bf16 %v3089_v0, %v3088_v45  ;;  %v1809_v55 = vpop.f32.mrb[155].mxu1  ;;  %2910 = vmatpush3.bf16.msra.mxu0 %v1854_v17  ;;  %v3291_v17 = vld [vmem:[%s4559_s0 + $0x90] ss:$8 sps:$4 sm:$0xff]  }
 0x5bb   :  { %v1863_v58 = vpack.c.bf16 %v1809_v55, %v1806_v48 }
 0x5bd   :  { %2911 = vmatprep.subr.bf16.mxu0 %v1863_v58 }
 0x5be   :  { %2912 = vmatpush3.bf16.msra.mxu0 %v1855_v37  ;;  %v3299_v37 = vld [vmem:[%s4559_s0 + $0xd0] ss:$8 sps:$4 sm:$0xff]  }
 0x5bf   :  { %v3092_v62 = vpop.f32.mrb[156].mxu1  ;;  %2913 = vmatprep.subr.bf16.mxu0 %v1864_v54 }
 0x5c0   :  { %v1822_v1 = vpop.f32.mrb[157].mxu1 }
 0x5c1   :  { %v3093_v4 = vpop.f32.mrb[158].mxu1 }
 0x5c2   :  { %v1866_v53 = vpack.c.bf16 %v3093_v4, %v3092_v62  ;;  %v1825_v9 = vpop.f32.mrb[159].mxu1  ;;  %2914 = vmatpush3.bf16.msra.mxu0 %v1856_v24  ;;  %v3297_v24 = vld [vmem:[%s4559_s0 + $0xc0] ss:$8 sps:$4 sm:$0xff]  }
 0x5c3   :  { %v1865_v13 = vpack.c.bf16 %v1825_v9, %v1822_v1  ;;  %v4248_v62 = vld [vmem:[%s4567_s8] ss:$0 sm:$0xff] }
 0x5c5   :  { %2915 = vmatprep.subr.bf16.mxu0 %v1865_v13 }
 0x5c6   :  { %2916 = vmatpush3.bf16.msra.mxu0 %v1857_v32 }
 0x5c7   :  { %v3096_v14 = vpop.f32.mrb[160].mxu1  ;;  %2917 = vmatprep.subr.bf16.mxu0 %v1866_v53 }
 0x5c8   :  { %v1838_v56 = vpop.f32.mrb[161].mxu1 }
 0x5c9   :  { %v3097_v61 = vpop.f32.mrb[162].mxu1 }
 0x5ca   :  { %v1868_v2 = vpack.c.bf16 %v3097_v61, %v3096_v14  ;;  %v1841_v27 = vpop.f32.mrb[163].mxu1  ;;  %2918 = vmatpush3.bf16.msra.mxu0 %v1858_v23  ;;  %v3303_v23 = vld [vmem:[%s4559_s0 + $0xf0] ss:$8 sps:$4 sm:$0xff]  }
 0x5cb   :  { %v1867_v30 = vpack.c.bf16 %v1841_v27, %v1838_v56 }
 0x5cd   :  { %2919 = vmatprep.subr.bf16.mxu0 %v1867_v30 }
 0x5ce   :  { %2920 = vmatpush3.bf16.msra.mxu0 %v1859_v44 }
 0x5cf   :  { %2921 = vmatprep.subr.bf16.mxu0 %v1868_v2 }
 0x5d2   :  { %2922 = vmatpush3.bf16.msra.mxu0 %v1860_v38 }
 0x5d5   :  { %1909 = vmatmul.mubr.bf16.vlgmr.msra.gmra.mrb[124].mxu0 %v3273_v11 }
 0x5d6   :  { %1916 = vmatprep.mubr.bf16.mxu0 %v3274_v34 }
 0x5dd   :  { %1917 = vmatmul.mubr.bf16.gmra.mrb[128].mxu0 %v3275_v15 }
 0x5de   :  { %1924 = vmatprep.mubr.bf16.mxu0 %v3276_v26 }
 0x5e5   :  { %1925 = vmatmul.mubr.bf16.gmra.mrb[132].mxu0 %v3277_v3 }
 0x5e6   :  { %1932 = vmatprep.mubr.bf16.mxu0 %v3278_v29 }
 0x5ed   :  { %1933 = vmatmul.mubr.bf16.gmra.mrb[136].mxu0 %v3279_v22 }
 0x5ee   :  { %1940 = vmatprep.mubr.bf16.mxu0 %v3280_v35 }
 0x5f5   :  { %1941 = vmatmul.mubr.bf16.gmra.mrb[140].mxu0 %v3281_v25 }
 0x5f6   :  { %1948 = vmatprep.mubr.bf16.mxu0 %v3282_v43 }
 0x5fd   :  { %1949 = vmatmul.mubr.bf16.gmra.mrb[144].mxu0 %v3283_v46 }
 0x5fe   :  { %1956 = vmatprep.mubr.bf16.mxu0 %v3284_v47 }
 0x605   :  { %1957 = vmatmul.mubr.bf16.gmra.mrb[148].mxu0 %v3285_v36 }
 0x606   :  { %1964 = vmatprep.mubr.bf16.mxu0 %v3286_v5 }
 0x60d   :  { %1965 = vmatmul.mubr.bf16.gmra.mrb[152].mxu0 %v3287_v20 }
 0x60e   :  { %1972 = vmatprep.mubr.bf16.mxu0 %v3288_v28 }
 0x615   :  { %1973 = vmatmul.mubr.bf16.gmra.mrb[156].mxu0 %v3289_v18 }
 0x616   :  { %1980 = vmatprep.mubr.bf16.mxu0 %v3290_v33 }
 0x61d   :  { %1981 = vmatmul.mubr.bf16.gmra.mrb[160].mxu0 %v3291_v17 }
 0x61e   :  { %1988 = vmatprep.mubr.bf16.mxu0 %v3292_v19 }
 0x625   :  { %1989 = vmatmul.mubr.bf16.gmra.mrb[164].mxu0 %v3293_v49 }
 0x626   :  { %1996 = vmatprep.mubr.bf16.mxu0 %v3294_v51 }
 0x62d   :  { %1997 = vmatmul.mubr.bf16.gmra.mrb[168].mxu0 %v3295_v8 }
 0x62e   :  { %2004 = vmatprep.mubr.bf16.mxu0 %v3296_v16 }
 0x635   :  { %2005 = vmatmul.mubr.bf16.gmra.mrb[172].mxu0 %v3297_v24 }
 0x636   :  { %2012 = vmatprep.mubr.bf16.mxu0 %v3298_v31 }
 0x63d   :  { %2013 = vmatmul.mubr.bf16.gmra.mrb[176].mxu0 %v3299_v37 }
 0x63e   :  { %2020 = vmatprep.mubr.bf16.mxu0 %v3300_v42 }
 0x645   :  { %2021 = vmatmul.mubr.bf16.gmra.mrb[180].mxu0 %v3301_v63 }
 0x646   :  { %2028 = vmatprep.mubr.bf16.mxu0 %v3302_v6 }
 0x64d   :  { %2029 = vmatmul.mubr.bf16.gmra.mrb[184].mxu0 %v3303_v23 }
 0x6a8   :  { %v2923_v7 = vpop.f32.mrb[124].mxu0 }
 0x6a9   :  { %v2924_v32 = vpop.f32.mrb[125].mxu0 }
 0x6aa   :  { %v2925_v50 = vadd.f32 %v2924_v32, %v2923_v7  ;;  %v2926_v57 = vpop.f32.mrb[126].mxu0 }
 0x6ab   :  { %v2927_v21 = vpop.f32.mrb[127].mxu0 }
 0x6ac   :  { %v2928_v38 = vadd.f32 %v2927_v21, %v2926_v57  ;;  %v1911_v14 = vadd.f32 %v2925_v50, %v4248_v62 }
 0x6ae   :  { %v1914_v53 = vadd.f32 %v2928_v38, %v4248_v62  ;;  %v4255_v27 = vmax.f32 %v1911_v14, 0.0 }
 0x6b0   :  { %v2929_v10 = vpop.f32.mrb[128].mxu0  ;;  %v4253_v61 = vmax.f32 %v1914_v53, 0.0  ;;  %v2109_v25 = vmul.f32 %v4255_v27, %v4255_v27 }
 0x6b1   :  { %v2930_v44 = vpop.f32.mrb[129].mxu0 }
 0x6b2   :  { %v2931_v52 = vadd.f32 %v2930_v44, %v2929_v10  ;;  %v2932_v59 = vpop.f32.mrb[130].mxu0  ;;  %v2110_v3 = vmul.f32 %v4253_v61, %v4253_v61  ;;  %v2071_v47 = vadd.f32 %v4253_v61, %v4255_v27 }
 0x6b3   :  { %v2933_v39 = vpop.f32.mrb[131].mxu0 }
 0x6b4   :  { %v2934_v40 = vadd.f32 %v2933_v39, %v2932_v59  ;;  %v1919_v56 = vadd.f32 %v2931_v52, %v4248_v62  ;;  %v2141_v36 = vadd.f32 %v2110_v3, %v2109_v25 }
 0x6b6   :  { %v4257_v30 = vmax.f32 %v1919_v56, 0.0  ;;  %v1922_v11 = vadd.f32 %v2934_v40, %v4248_v62 }
 0x6b8   :  { %v2935_v41 = vpop.f32.mrb[132].mxu0  ;;  %v2111_v43 = vmul.f32 %v4257_v30, %v4257_v30  ;;  %v4267_v46 = vmax.f32 %v1922_v11, 0.0  ;;  %v2072_v28 = vadd.f32 %v2071_v47, %v4257_v30 }
 0x6b9   :  { %v2936_v12 = vpop.f32.mrb[133].mxu0 }
 0x6ba   :  { %v2937_v45 = vadd.f32 %v2936_v12, %v2935_v41  ;;  %v2938_v48 = vpop.f32.mrb[134].mxu0  ;;  %v2142_v33 = vadd.f32 %v2141_v36, %v2111_v43  ;;  %v2112_v17 = vmul.f32 %v4267_v46, %v4267_v46  ;;  %v2073_v37 = vadd.f32 %v2072_v28, %v4267_v46 }
 0x6bb   :  { %v2939_v0 = vpop.f32.mrb[135].mxu0 }
 0x6bc   :  { %v2940_v54 = vadd.f32 %v2939_v0, %v2938_v48  ;;  %v1927_v29 = vadd.f32 %v2937_v45, %v4248_v62  ;;  %v2143_v63 = vadd.f32 %v2142_v33, %v2112_v17 }
 0x6be   :  { %v4271_v5 = vmax.f32 %v1927_v29, 0.0  ;;  %v1930_v20 = vadd.f32 %v2940_v54, %v4248_v62 }
 0x6c0   :  { %v2941_v55 = vpop.f32.mrb[136].mxu0  ;;  %v2113_v16 = vmul.f32 %v4271_v5, %v4271_v5  ;;  %v4280_v24 = vmax.f32 %v1930_v20, 0.0  ;;  %v2074_v7 = vadd.f32 %v2073_v37, %v4271_v5 }
 0x6c1   :  { %v2942_v58 = vpop.f32.mrb[137].mxu0 }
 0x6c2   :  { %v2943_v1 = vadd.f32 %v2942_v58, %v2941_v55  ;;  %v2944_v4 = vpop.f32.mrb[138].mxu0  ;;  %v2144_v32 = vadd.f32 %v2143_v63, %v2113_v16  ;;  %v2114_v50 = vmul.f32 %v4280_v24, %v4280_v24  ;;  %v2075_v52 = vadd.f32 %v2074_v7, %v4280_v24 }
 0x6c3   :  { %v2945_v9 = vpop.f32.mrb[139].mxu0 }
 0x6c4   :  { %v2946_v13 = vadd.f32 %v2945_v9, %v2944_v4  ;;  %v1935_v19 = vadd.f32 %v2943_v1, %v4248_v62  ;;  %v2145_v40 = vadd.f32 %v2144_v32, %v2114_v50 }
 0x6c6   :  { %v4283_v6 = vmax.f32 %v1935_v19, 0.0  ;;  %v1938_v23 = vadd.f32 %v2946_v13, %v4248_v62 }
 0x6c8   :  { %v2947_v2 = vpop.f32.mrb[140].mxu0  ;;  %v2115_v38 = vmul.f32 %v4283_v6, %v4283_v6  ;;  %v4292_v10 = vmax.f32 %v1938_v23, 0.0  ;;  %v2076_v48 = vadd.f32 %v2075_v52, %v4283_v6 }
 0x6c9   :  { %v2948_v34 = vpop.f32.mrb[141].mxu0 }
 0x6ca   :  { %v2949_v15 = vadd.f32 %v2948_v34, %v2947_v2  ;;  %v2950_v26 = vpop.f32.mrb[142].mxu0  ;;  %v2146_v54 = vadd.f32 %v2145_v40, %v2115_v38  ;;  %v2116_v55 = vmul.f32 %v4292_v10, %v4292_v10  ;;  %v2077_v53 = vadd.f32 %v2076_v48, %v4292_v10 }
 0x6cb   :  { %v2951_v22 = vpop.f32.mrb[143].mxu0 }
 0x6cc   :  { %v2952_v35 = vadd.f32 %v2951_v22, %v2950_v26  ;;  %v1943_v57 = vadd.f32 %v2949_v15, %v4248_v62  ;;  %v2147_v13 = vadd.f32 %v2146_v54, %v2116_v55 }
 0x6ce   :  { %v4295_v41 = vmax.f32 %v1943_v57, 0.0  ;;  %v1946_v12 = vadd.f32 %v2952_v35, %v4248_v62 }
 0x6d0   :  { %v2953_v18 = vpop.f32.mrb[144].mxu0  ;;  %v2117_v1 = vmul.f32 %v4295_v41, %v4295_v41  ;;  %v4304_v4 = vmax.f32 %v1946_v12, 0.0  ;;  %v2078_v11 = vadd.f32 %v2077_v53, %v4295_v41 }
 0x6d1   :  { %v2954_v49 = vpop.f32.mrb[145].mxu0 }
 0x6d2   :  { %v2955_v51 = vadd.f32 %v2954_v49, %v2953_v18  ;;  %v2956_v8 = vpop.f32.mrb[146].mxu0  ;;  %v2148_v26 = vadd.f32 %v2147_v13, %v2117_v1  ;;  %v2118_v3 = vmul.f32 %v4304_v4, %v4304_v4  ;;  %v2079_v47 = vadd.f32 %v2078_v11, %v4304_v4 }
 0x6d3   :  { %v2957_v31 = vpop.f32.mrb[147].mxu0 }
 0x6d4   :  { %v2958_v42 = vadd.f32 %v2957_v31, %v2956_v8  ;;  %v1951_v58 = vadd.f32 %v2955_v51, %v4248_v62  ;;  %v2149_v36 = vadd.f32 %v2148_v26, %v2118_v3 }
 0x6d6   :  { %v4307_v14 = vmax.f32 %v1951_v58, 0.0  ;;  %v1954_v56 = vadd.f32 %v2958_v42, %v4248_v62 }
 0x6d8   :  { %v2959_v21 = vpop.f32.mrb[148].mxu0  ;;  %v2119_v25 = vmul.f32 %v4307_v14, %v4307_v14  ;;  %v4316_v43 = vmax.f32 %v1954_v56, 0.0  ;;  %v2080_v18 = vadd.f32 %v2079_v47, %v4307_v14 }
 0x6d9   :  { %v2960_v44 = vpop.f32.mrb[149].mxu0 }
 0x6da   :  { %v2961_v59 = vadd.f32 %v2960_v44, %v2959_v21  ;;  %v2962_v39 = vpop.f32.mrb[150].mxu0  ;;  %v2150_v17 = vadd.f32 %v2149_v36, %v2119_v25  ;;  %v2120_v19 = vmul.f32 %v4316_v43, %v4316_v43  ;;  %v2081_v63 = vadd.f32 %v2080_v18, %v4316_v43 }
 0x6db   :  { %v2963_v45 = vpop.f32.mrb[151].mxu0 }
 0x6dc   :  { %v2964_v0 = vadd.f32 %v2963_v45, %v2962_v39  ;;  %v1959_v29 = vadd.f32 %v2961_v59, %v4248_v62  ;;  %v2151_v7 = vadd.f32 %v2150_v17, %v2120_v19 }
 0x6de   :  { %v4319_v20 = vmax.f32 %v1959_v29, 0.0  ;;  %v1962_v28 = vadd.f32 %v2964_v0, %v4248_v62 }
 0x6e0   :  { %v2965_v9 = vpop.f32.mrb[152].mxu0  ;;  %v2121_v31 = vmul.f32 %v4319_v20, %v4319_v20  ;;  %v4328_v37 = vmax.f32 %v1962_v28, 0.0  ;;  %v2082_v57 = vadd.f32 %v2081_v63, %v4319_v20  ;;  %v4362_v28 = vld [vmem:[%s4568_s2] sm:$0xff] }
 0x6e1   :  { %v2966_v2 = vpop.f32.mrb[153].mxu0 }
 0x6e2   :  { %v2967_v34 = vadd.f32 %v2966_v2, %v2965_v9  ;;  %v2968_v15 = vpop.f32.mrb[154].mxu0  ;;  %v2152_v21 = vadd.f32 %v2151_v7, %v2121_v31  ;;  %v2122_v38 = vmul.f32 %v4328_v37, %v4328_v37  ;;  %v2083_v12 = vadd.f32 %v2082_v57, %v4328_v37 }
 0x6e3   :  { %v2969_v22 = vpop.f32.mrb[155].mxu0 }
 0x6e4   :  { %v2970_v35 = vadd.f32 %v2969_v22, %v2968_v15  ;;  %v1967_v49 = vadd.f32 %v2967_v34, %v4248_v62  ;;  %v2153_v0 = vadd.f32 %v2152_v21, %v2122_v38 }
 0x6e6   :  { %v4331_v32 = vmax.f32 %v1967_v49, 0.0  ;;  %v1970_v50 = vadd.f32 %v2970_v35, %v4248_v62  ;;  %v2537_v49 = vcombine.high %v4362_v28, %v4362_v28 }
 0x6e8   :  { %v2971_v33 = vpop.f32.mrb[156].mxu0  ;;  %v2123_v59 = vmul.f32 %v4331_v32, %v4331_v32  ;;  %v4340_v39 = vmax.f32 %v1970_v50, 0.0  ;;  %v2084_v55 = vadd.f32 %v2083_v12, %v4331_v32  ;;  %2318 = vmatprep.mubr.bf16.mxu1 %v2537_v49 }
 0x6e9   :  { %v2972_v51 = vpop.f32.mrb[157].mxu0 }
 0x6ea   :  { %v2973_v8 = vadd.f32 %v2972_v51, %v2971_v33  ;;  %v2974_v16 = vpop.f32.mrb[158].mxu0  ;;  %v2154_v9 = vadd.f32 %v2153_v0, %v2123_v59  ;;  %v2124_v13 = vmul.f32 %v4340_v39, %v4340_v39  ;;  %v2085_v2 = vadd.f32 %v2084_v55, %v4340_v39 }
 0x6eb   :  { %v2975_v42 = vpop.f32.mrb[159].mxu0 }
 0x6ec   :  { %v2976_v23 = vadd.f32 %v2975_v42, %v2974_v16  ;;  %v1975_v44 = vadd.f32 %v2973_v8, %v4248_v62  ;;  %v2155_v26 = vadd.f32 %v2154_v9, %v2124_v13 }
 0x6ee   :  { %v4344_v58 = vmax.f32 %v1975_v44, 0.0  ;;  %v1978_v1 = vadd.f32 %v2976_v23, %v4248_v62 }
 0x6f0   :  { %v2977_v52 = vpop.f32.mrb[160].mxu0  ;;  %v2125_v11 = vmul.f32 %v4344_v58, %v4344_v58  ;;  %v4353_v34 = vmax.f32 %v1978_v1, 0.0  ;;  %v2086_v29 = vadd.f32 %v2085_v2, %v4344_v58 }
 0x6f1   :  { %v2978_v40 = vpop.f32.mrb[161].mxu0 }
 0x6f2   :  { %v2979_v45 = vadd.f32 %v2978_v40, %v2977_v52  ;;  %v2980_v48 = vpop.f32.mrb[162].mxu0  ;;  %v2156_v18 = vadd.f32 %v2155_v26, %v2125_v11  ;;  %v2126_v33 = vmul.f32 %v4353_v34, %v4353_v34  ;;  %v2087_v51 = vadd.f32 %v2086_v29, %v4353_v34 }
 0x6f3   :  { %v2981_v54 = vpop.f32.mrb[163].mxu0 }
 0x6f4   :  { %v2982_v53 = vadd.f32 %v2981_v54, %v2980_v48  ;;  %v1983_v56 = vadd.f32 %v2979_v45, %v4248_v62  ;;  %v2157_v42 = vadd.f32 %v2156_v18, %v2126_v33 }
 0x6f6   :  { %v4356_v22 = vmax.f32 %v1983_v56, 0.0  ;;  %v1986_v35 = vadd.f32 %v2982_v53, %v4248_v62 }
 0x6f8   :  { %v2983_v15 = vpop.f32.mrb[164].mxu0  ;;  %v2127_v8 = vmul.f32 %v4356_v22, %v4356_v22  ;;  %v4372_v16 = vmax.f32 %v1986_v35, 0.0  ;;  %v2088_v63 = vadd.f32 %v2087_v51, %v4356_v22 }
 0x6f9   :  { %v2984_v3 = vpop.f32.mrb[165].mxu0 }
 0x6fa   :  { %v2985_v25 = vadd.f32 %v2984_v3, %v2983_v15  ;;  %v2986_v47 = vpop.f32.mrb[166].mxu0  ;;  %v2158_v57 = vadd.f32 %v2157_v42, %v2127_v8  ;;  %v2128_v21 = vmul.f32 %v4372_v16, %v4372_v16  ;;  %v2089_v40 = vadd.f32 %v2088_v63, %v4372_v16 }
 0x6fb   :  { %v2987_v36 = vpop.f32.mrb[167].mxu0 }
 0x6fc   :  { %v1991_v17 = vadd.f32 %v2985_v25, %v4248_v62  ;;  %v2988_v19 = vadd.f32 %v2987_v36, %v2986_v47  ;;  %v2159_v0 = vadd.f32 %v2158_v57, %v2128_v21 }
 0x6fe   :  { %v1994_v31 = vadd.f32 %v2988_v19, %v4248_v62  ;;  %v4376_v23 = vmax.f32 %v1991_v17, 0.0 }
 0x700   :  { %v2989_v7 = vpop.f32.mrb[168].mxu0  ;;  %v4380_v52 = vmax.f32 %v1994_v31, 0.0  ;;  %v2129_v12 = vmul.f32 %v4376_v23, %v4376_v23  ;;  %v2090_v54 = vadd.f32 %v2089_v40, %v4376_v23 }
 0x701   :  { %v2990_v50 = vpop.f32.mrb[169].mxu0 }
 0x702   :  { %v2991_v38 = vadd.f32 %v2990_v50, %v2989_v7  ;;  %v2992_v44 = vpop.f32.mrb[170].mxu0  ;;  %v2160_v53 = vadd.f32 %v2159_v0, %v2129_v12  ;;  %v2130_v9 = vmul.f32 %v4380_v52, %v4380_v52  ;;  %v2091_v2 = vadd.f32 %v2090_v54, %v4380_v52 }
 0x703   :  { %v2993_v59 = vpop.f32.mrb[171].mxu0 }
 0x704   :  { %v1999_v45 = vadd.f32 %v2991_v38, %v4248_v62  ;;  %v2994_v48 = vadd.f32 %v2993_v59, %v2992_v44  ;;  %v2161_v35 = vadd.f32 %v2160_v53, %v2130_v9 }
 0x706   :  { %v4387_v55 = vmax.f32 %v1999_v45, 0.0  ;;  %v2002_v1 = vadd.f32 %v2994_v48, %v4248_v62 }
 0x708   :  { %v2995_v13 = vpop.f32.mrb[172].mxu0  ;;  %v2131_v11 = vmul.f32 %v4387_v55, %v4387_v55  ;;  %v4395_v15 = vmax.f32 %v2002_v1, 0.0  ;;  %v2092_v25 = vadd.f32 %v2091_v2, %v4387_v55 }
 0x709   :  { %v2996_v56 = vpop.f32.mrb[173].mxu0 }
 0x70a   :  { %v2997_v26 = vadd.f32 %v2996_v56, %v2995_v13  ;;  %v2998_v3 = vpop.f32.mrb[174].mxu0  ;;  %v2162_v18 = vadd.f32 %v2161_v35, %v2131_v11  ;;  %v2132_v33 = vmul.f32 %v4395_v15, %v4395_v15  ;;  %v2093_v49 = vadd.f32 %v2092_v25, %v4395_v15 }
 0x70b   :  { %v2999_v29 = vpop.f32.mrb[175].mxu0 }
 0x70c   :  { %v2007_v47 = vadd.f32 %v2997_v26, %v4248_v62  ;;  %v3000_v36 = vadd.f32 %v2999_v29, %v2998_v3  ;;  %v2163_v63 = vadd.f32 %v2162_v18, %v2132_v33 }
 0x70e   :  { %v4401_v17 = vmax.f32 %v2007_v47, 0.0  ;;  %v2010_v19 = vadd.f32 %v3000_v36, %v4248_v62 }
 0x710   :  { %v2133_v51 = vmul.f32 %v4401_v17, %v4401_v17  ;;  %v4407_v8 = vmax.f32 %v2010_v19, 0.0  ;;  %v3001_v31 = vpop.f32.mrb[176].mxu0  ;;  %v2094_v7 = vadd.f32 %v2093_v49, %v4401_v17 }
 0x711   :  { %v3002_v42 = vpop.f32.mrb[177].mxu0 }
 0x712   :  { %v3003_v50 = vadd.f32 %v3002_v42, %v3001_v31  ;;  %v3004_v57 = vpop.f32.mrb[178].mxu0  ;;  %v2164_v38 = vadd.f32 %v2163_v63, %v2133_v51  ;;  %v2134_v44 = vmul.f32 %v4407_v8, %v4407_v8  ;;  %v2095_v12 = vadd.f32 %v2094_v7, %v4407_v8 }
 0x713   :  { %v3005_v21 = vpop.f32.mrb[179].mxu0 }
 0x714   :  { %v2015_v59 = vadd.f32 %v3003_v50, %v4248_v62  ;;  %v3006_v40 = vadd.f32 %v3005_v21, %v3004_v57  ;;  %v2165_v0 = vadd.f32 %v2164_v38, %v2134_v44 }
 0x716   :  { %v4414_v45 = vmax.f32 %v2015_v59, 0.0  ;;  %v2018_v48 = vadd.f32 %v3006_v40, %v4248_v62 }
 0x718   :  { %v2096_v54 = vadd.f32 %v2095_v12, %v4414_v45  ;;  %v2135_v1 = vmul.f32 %v4414_v45, %v4414_v45  ;;  %v4420_v53 = vmax.f32 %v2018_v48, 0.0  ;;  %v3007_v9 = vpop.f32.mrb[180].mxu0 }
 0x719   :  { %v3008_v13 = vpop.f32.mrb[181].mxu0 }
 0x71a   :  { %v2166_v56 = vadd.f32 %v2165_v0, %v2135_v1  ;;  %v2097_v2 = vadd.f32 %v2096_v54, %v4420_v53  ;;  %v2136_v11 = vmul.f32 %v4420_v53, %v4420_v53  ;;  %v3009_v26 = vadd.f32 %v3008_v13, %v3007_v9  ;;  %v3010_v3 = vpop.f32.mrb[182].mxu0 }
 0x71b   :  { %v3011_v29 = vpop.f32.mrb[183].mxu0 }
 0x71c   :  { %v2167_v35 = vadd.f32 %v2166_v56, %v2136_v11  ;;  %v2023_v25 = vadd.f32 %v3009_v26, %v4248_v62  ;;  %v3012_v47 = vadd.f32 %v3011_v29, %v3010_v3 }
 0x71e   :  { %v4426_v36 = vmax.f32 %v2023_v25, 0.0  ;;  %v2026_v18 = vadd.f32 %v3012_v47, %v4248_v62 }
 0x720   :  { %v2098_v33 = vadd.f32 %v2097_v2, %v4426_v36  ;;  %v2137_v19 = vmul.f32 %v4426_v36, %v4426_v36  ;;  %v4432_v49 = vmax.f32 %v2026_v18, 0.0  ;;  %v3013_v51 = vpop.f32.mrb[184].mxu0 }
 0x721   :  { %v3014_v31 = vpop.f32.mrb[185].mxu0 }
 0x722   :  { %v2168_v42 = vadd.f32 %v2167_v35, %v2137_v19  ;;  %v2099_v63 = vadd.f32 %v2098_v33, %v4432_v49  ;;  %v2138_v7 = vmul.f32 %v4432_v49, %v4432_v49  ;;  %v3015_v50 = vadd.f32 %v3014_v31, %v3013_v51  ;;  %v3016_v57 = vpop.f32.mrb[186].mxu0 }
 0x723   :  { %v3017_v21 = vpop.f32.mrb[187].mxu0 }
 0x724   :  { %v2169_v38 = vadd.f32 %v2168_v42, %v2138_v7  ;;  %v2031_v44 = vadd.f32 %v3015_v50, %v4248_v62  ;;  %v3018_v59 = vadd.f32 %v3017_v21, %v3016_v57  ;;  %v2069_v57 = vld [vmem:[%s4570_s11] sm:$0x1] }
 0x726   :  { %v4438_v40 = vmax.f32 %v2031_v44, 0.0  ;;  %v2034_v12 = vadd.f32 %v3018_v59, %v4248_v62  ;;  %v2070_v44 = vld [vmem:[%s4571_s12] sm:$0x1] }
 0x728   :  { %v2100_v48 = vadd.f32 %v2099_v63, %v4438_v40  ;;  %v2139_v0 = vmul.f32 %v4438_v40, %v4438_v40  ;;  %v2068_v54 = vmax.f32 %v2034_v12, 0.0 }
 0x72a   :  { %v2170_v1 = vadd.f32 %v2169_v38, %v2139_v0  ;;  %v2101_v9 = vadd.f32 %v2100_v48, %v2068_v54  ;;  %v2140_v13 = vmul.f32 %v2068_v54, %v2068_v54 }
 0x72c   :  { %v2102_v56 = vrot.slane %v2101_v9, 4  ;;  %v2171_v2 = vadd.f32 %v2170_v1, %v2140_v13 }
 0x72e   :  { %v2103_v11 = vadd.f32 %v2102_v56, %v2101_v9  ;;  %v2172_v26 = vrot.slane %v2171_v2, 4 }
 0x730   :  { %v2104_v3 = vrot.slane %v2103_v11, 2  ;;  %v2173_v29 = vadd.f32 %v2172_v26, %v2171_v2 }
 0x732   :  { %v2105_v35 = vadd.f32 %v2104_v3, %v2103_v11  ;;  %v2174_v25 = vrot.slane %v2173_v29, 2 }
 0x734   :  { %v2106_v47 = vrot.slane %v2105_v35, 1  ;;  %v2175_v18 = vadd.f32 %v2174_v25, %v2173_v29 }
 0x736   :  { %v2107_v62 = vadd.f32 %v2106_v47, %v2105_v35  ;;  %v2176_v33 = vrot.slane %v2175_v18, 1 }
 0x738   :  { %v2108_v19 = vmul.f32 0.00390625, %v2107_v62  ;;  %v2177_v51 = vadd.f32 %v2176_v33, %v2175_v18 }
 0x73a   :  { %v2178_v31 = vmul.f32 0.00390625, %v2177_v51  ;;  %v2179_v42 = vmul.f32 %v2108_v19, %v2108_v19 }
 0x73c   :  { %v2180_v63 = vsub.f32 %v2178_v31, %v2179_v42 }
 0x73e   :  { %v2181_v7 = vmax.f32 %v2180_v63, 0.0 }
 0x740   :  { %v2182_v50 = vadd.f32 1e-05, %v2181_v7 }
 0x742   :  { %3239 = vrsqrt.f32 %v2182_v50 }
 0x74c   :  { %v3240_v21 = vpop.eup %3239 }
 0x74d   :  { %v2184_v38 = vmul.f32 %v3240_v21, %v2069_v57 }
 0x74f   :  { %v2185_v59 = vmul.f32 %v2184_v38, %v2108_v19  ;;  %v2191_v12 = vrot.slane %v2184_v38, %v3627_v60 }
 0x751   :  { %v2186_v48 = vsub.f32 %v2070_v44, %v2185_v59  ;;  %v4451_v0 = vmul.f32 %v2191_v12, %v2068_v54  ;;  %v2193_v1 = vmul.f32 %v2191_v12, %v4255_v27  ;;  %v2194_v9 = vmul.f32 %v2191_v12, %v4253_v61 }
 0x752   :  { %v2195_v13 = vmul.f32 %v2191_v12, %v4257_v30  ;;  %v2196_v56 = vmul.f32 %v2191_v12, %v4267_v46  ;;  %v2197_v2 = vmul.f32 %v2191_v12, %v4271_v5  ;;  %v2198_v11 = vmul.f32 %v2191_v12, %v4280_v24 }
 0x753   :  { %v4460_v26 = vrot.slane %v2186_v48, %v3627_v60  ;;  %v2199_v3 = vmul.f32 %v2191_v12, %v4283_v6  ;;  %v2200_v54 = vmul.f32 %v2191_v12, %v4292_v10  ;;  %v2201_v29 = vmul.f32 %v2191_v12, %v4295_v41 }
 0x754   :  { %v2202_v27 = vmul.f32 %v2191_v12, %v4304_v4  ;;  %v2203_v61 = vmul.f32 %v2191_v12, %v4307_v14  ;;  %v2204_v30 = vmul.f32 %v2191_v12, %v4316_v43  ;;  %v2205_v46 = vmul.f32 %v2191_v12, %v4319_v20 }
 0x755   :  { %v2206_v5 = vmul.f32 %v2191_v12, %v4328_v37  ;;  %v4471_v24 = vmul.f32 %v2191_v12, %v4331_v32  ;;  %v4474_v60 = vmul.f32 %v2191_v12, %v4340_v39  ;;  %v2209_v6 = vmul.f32 %v2191_v12, %v4344_v58 }
 0x756   :  { %v2210_v10 = vmul.f32 %v2191_v12, %v4353_v34  ;;  %v2211_v41 = vmul.f32 %v2191_v12, %v4356_v22  ;;  %v2212_v4 = vmul.f32 %v2191_v12, %v4372_v16  ;;  %v2213_v14 = vmul.f32 %v2191_v12, %v4376_v23 }
 0x757   :  { %v2214_v43 = vmul.f32 %v2191_v12, %v4380_v52  ;;  %v2215_v20 = vmul.f32 %v2191_v12, %v4387_v55  ;;  %v2216_v37 = vmul.f32 %v2191_v12, %v4395_v15  ;;  %v2217_v32 = vmul.f32 %v2191_v12, %v4401_v17 }
 0x758   :  { %v2218_v39 = vmul.f32 %v2191_v12, %v4407_v8  ;;  %v2219_v58 = vmul.f32 %v2191_v12, %v4414_v45  ;;  %v2220_v34 = vmul.f32 %v2191_v12, %v4420_v53  ;;  %v2221_v22 = vmul.f32 %v2191_v12, %v4426_v36 }
 0x759   :  { %v2222_v16 = vmul.f32 %v2191_v12, %v4432_v49  ;;  %v2223_v23 = vmul.f32 %v2191_v12, %v4438_v40  ;;  %v2247_v52 = vadd.f32 %v4460_v26, %v2209_v6  ;;  %v2248_v55 = vadd.f32 %v4460_v26, %v2210_v10 }
 0x75a   :  { %v2231_v15 = vadd.f32 %v4460_v26, %v2193_v1  ;;  %v2232_v17 = vadd.f32 %v4460_v26, %v2194_v9  ;;  %v2249_v8 = vadd.f32 %v4460_v26, %v2211_v41  ;;  %v2250_v45 = vadd.f32 %v4460_v26, %v2212_v4 }
 0x75b   :  { %v2271_v35 = vpack.c.bf16 %v2248_v55, %v2247_v52  ;;  %v2233_v53 = vadd.f32 %v4460_v26, %v2195_v13  ;;  %v2234_v36 = vadd.f32 %v4460_v26, %v2196_v56  ;;  %v2251_v49 = vadd.f32 %v4460_v26, %v2213_v14  ;;  %v2538_v52 = vld [vmem:[%s4572_s14] ss:$0 sm:$0xff] }
 0x75c   :  { %v2263_v40 = vpack.c.bf16 %v2232_v17, %v2231_v15  ;;  %v2272_v25 = vpack.c.bf16 %v2250_v45, %v2249_v8  ;;  %v2252_v47 = vadd.f32 %v4460_v26, %v2214_v43  ;;  %v2235_v18 = vadd.f32 %v4460_v26, %v2197_v2  ;;  %v3233_v43 = vld [vmem:[%s4569_s13 + $0x20] sm:$0xff]  }
 0x75d   :  { %3019 = vmatprep.subr.bf16.mxu1 %v2271_v35  ;;  %v2264_v62 = vpack.c.bf16 %v2234_v36, %v2233_v53  ;;  %v2236_v33 = vadd.f32 %v4460_v26, %v2198_v11  ;;  %v2253_v19 = vadd.f32 %v4460_v26, %v2215_v20  ;;  %v2254_v51 = vadd.f32 %v4460_v26, %v2216_v37  ;;  %v3234_v20 = vld [vmem:[%s4569_s13 + $0x28] sm:$0xff]   ;;  %v3235_v37 = vld [vmem:[%s4569_s13 + $0x30] sm:$0xff]  }
 0x75e   :  { %3020 = vmatpush3.bf16.msra.mxu1 %v2263_v40  ;;  %v2273_v31 = vpack.c.bf16 %v2252_v47, %v2251_v49  ;;  %v2237_v42 = vadd.f32 %v4460_v26, %v2199_v3  ;;  %v2238_v63 = vadd.f32 %v4460_v26, %v2200_v54  ;;  %v2255_v7 = vadd.f32 %v4460_v26, %v2217_v32  ;;  %v3236_v32 = vld [vmem:[%s4569_s13 + $0x38] sm:$0xff]  }
 0x75f   :  { %3021 = vmatprep.subr.bf16.mxu1 %v2272_v25  ;;  %v2265_v50 = vpack.c.bf16 %v2236_v33, %v2235_v18  ;;  %v2274_v57 = vpack.c.bf16 %v2254_v51, %v2253_v19  ;;  %v2256_v21 = vadd.f32 %v4460_v26, %v2218_v39  ;;  %v2239_v38 = vadd.f32 %v4460_v26, %v2201_v29 }
 0x760   :  { %v2266_v44 = vpack.c.bf16 %v2238_v63, %v2237_v42  ;;  %v2240_v59 = vadd.f32 %v4460_v26, %v2202_v27  ;;  %v2257_v12 = vadd.f32 %v4460_v26, %v2219_v58  ;;  %v2258_v48 = vadd.f32 %v4460_v26, %v2220_v34 }
 0x761   :  { %v2275_v1 = vpack.c.bf16 %v2256_v21, %v2255_v7  ;;  %v2241_v9 = vadd.f32 %v4460_v26, %v2203_v61  ;;  %v2242_v13 = vadd.f32 %v4460_v26, %v2204_v30  ;;  %v2259_v56 = vadd.f32 %v4460_v26, %v2221_v22 }
 0x762   :  { %3022 = vmatpush3.bf16.msra.mxu1 %v2264_v62  ;;  %v2267_v2 = vpack.c.bf16 %v2240_v59, %v2239_v38  ;;  %v2276_v11 = vpack.c.bf16 %v2258_v48, %v2257_v12  ;;  %v2260_v3 = vadd.f32 %v4460_v26, %v2222_v16  ;;  %v2243_v54 = vadd.f32 %v4460_v26, %v2205_v46 }
 0x763   :  { %3023 = vmatprep.subr.bf16.mxu1 %v2273_v31  ;;  %v2268_v29 = vpack.c.bf16 %v2242_v13, %v2241_v9  ;;  %v2244_v27 = vadd.f32 %v4460_v26, %v2206_v5  ;;  %v2261_v6 = vadd.f32 %v4460_v26, %v2223_v23  ;;  %v2262_v61 = vadd.f32 %v4460_v26, %v4451_v0 }
 0x764   :  { %v2277_v10 = vpack.c.bf16 %v2260_v3, %v2259_v56  ;;  %v2245_v30 = vadd.f32 %v4460_v26, %v4471_v24  ;;  %v2246_v41 = vadd.f32 %v4460_v26, %v4474_v60  ;;  %v2536_v0 = vcombine.low %v4362_v28, %v4362_v28  ;;  %v3229_v26 = vld [vmem:[%s4569_s13] sm:$0xff]   ;;  %v3230_v24 = vld [vmem:[%s4569_s13 + $0x8] sm:$0xff]   ;;  %v3231_v60 = vld [vmem:[%s4569_s13 + $0x10] sm:$0xff]  }
 0x765   :  { %v2269_v4 = vpack.c.bf16 %v2244_v27, %v2243_v54  ;;  %v2278_v14 = vpack.c.bf16 %v2262_v61, %v2261_v6  ;;  %v3305_v5 = vmov 0.0   ;;  %v3232_v28 = vld [vmem:[%s4569_s13 + $0x18] sm:$0xff]  }
 0x766   :  { %3024 = vmatpush3.bf16.msra.mxu1 %v2265_v50  ;;  %v2270_v46 = vpack.c.bf16 %v2246_v41, %v2245_v30 }
 0x767   :  { %3025 = vmatprep.subr.bf16.mxu1 %v2274_v57 }
 0x76a   :  { %3026 = vmatpush3.bf16.msra.mxu1 %v2266_v44 }
 0x76b   :  { %3027 = vmatprep.subr.bf16.mxu1 %v2275_v1 }
 0x76e   :  { %3028 = vmatpush3.bf16.msra.mxu1 %v2267_v2 }
 0x76f   :  { %3029 = vmatprep.subr.bf16.mxu1 %v2276_v11 }
 0x772   :  { %3030 = vmatpush3.bf16.msra.mxu1 %v2268_v29 }
 0x773   :  { %3031 = vmatprep.subr.bf16.mxu1 %v2277_v10 }
 0x776   :  { %3032 = vmatpush3.bf16.msra.mxu1 %v2269_v4 }
 0x777   :  { %3033 = vmatprep.subr.bf16.mxu1 %v2278_v14 }
 0x77a   :  { %3034 = vmatpush3.bf16.msra.mxu1 %v2270_v46 }
 0x77b   :  { %3098 = vmatprep.subr.bf16.mxu1 %v3305_v5 }
 0x77d   :  { %2319 = vmatmul.mubr.bf16.vlgmr.msra.gmra.mrb[164].mxu1 %v2536_v0 }
 0x77e   :  { %3099 = vmatpush3.bf16.msra.mxu1 %v3229_v26  ;;  %3114 = vmatprep.mubr.msk.bf16.mxu1 %vm3306_vm2, %v3305_v5 }
 0x77f   :  { %3100 = vmatprep.subr.bf16.mxu1 %v3305_v5 }
 0x782   :  { %3101 = vmatpush3.bf16.msra.mxu1 %v3230_v24 }
 0x783   :  { %3102 = vmatprep.subr.bf16.mxu1 %v3305_v5 }
 0x786   :  { %3103 = vmatpush3.bf16.msra.mxu1 %v3231_v60 }
 0x787   :  { %3104 = vmatprep.subr.bf16.mxu1 %v3305_v5 }
 0x78a   :  { %3105 = vmatpush3.bf16.msra.mxu1 %v3232_v28 }
 0x78b   :  { %3106 = vmatprep.subr.bf16.mxu1 %v3305_v5 }
 0x78e   :  { %3107 = vmatpush3.bf16.msra.mxu1 %v3233_v43 }
 0x78f   :  { %3108 = vmatprep.subr.bf16.mxu1 %v3305_v5 }
 0x792   :  { %3109 = vmatpush3.bf16.msra.mxu1 %v3234_v20 }
 0x793   :  { %3110 = vmatprep.subr.bf16.mxu1 %v3305_v5 }
 0x796   :  { %3111 = vmatpush3.bf16.msra.mxu1 %v3235_v37 }
 0x797   :  { %3112 = vmatprep.subr.bf16.mxu1 %v3305_v5 }
 0x79a   :  { %3113 = vmatpush3.bf16.msra.mxu1 %v3236_v32 }
 0x850   :  { %v3035_v39 = vpop.f32.mrb[164].mxu1 }
 0x851   :  { %v3036_v58 = vpop.f32.mrb[165].mxu1 }
 0x852   :  { %v3037_v34 = vadd.f32 %v3036_v58, %v3035_v39  ;;  %v3038_v22 = vpop.f32.mrb[166].mxu1 }
 0x853   :  { %v3039_v16 = vpop.f32.mrb[167].mxu1 }
 0x854   :  { %v2326_v23 = vpack.c.bf16 %v3037_v34, %v3037_v34 }
 0x856   :  { %3115 = vmatmul.mubr.bf16.vlgmr.msra.gmra.mrb[168].mxu1 %v2326_v23 }
 0x929   :  { %v2432_v55 = vpop.f32.mrb[168].mxu1 }
 0x92a   :  { %v2433_v15 = vadd.f32 %v2538_v52, %v2432_v55  ;;  %v3116_v17 = vpop.f32.mrb[169].mxu1 }
 0x92b   :  { %v2435_v8 = vpop.f32.mrb[170].mxu1 }
 0x92c   :  { %2438 = vst [vmem:[%s4573_s15] sm:$0xff] %v2433_v15  ;;  %v3117_v45 = vpop.f32.mrb[171].mxu1 }

</bundles_post_ra>
